<compile_context>
chip_gen: v5e
topology: v5e:2x2
jax: 0.10.0
libtpu: 0.0.40
codegen_flags: <defaults>
</compile_context>

<pallas_src>
import math
import functools

import jax
import jax.numpy as jnp
from jax import lax
from jax.experimental import pallas as pl
from jax.experimental.pallas import tpu as pltpu


_TAIL = 8  # sublane-aligned rows carried between L tiles for the causal conv


def _softplus(x):
    return jnp.maximum(x, 0.0) + jnp.log1p(jnp.exp(-jnp.abs(x)))


def _pad128(n):
    return ((n + 127) // 128) * 128


def mamba_kernel(hidden_ref, wxz_ref, convw_ref, convb_ref, xp_ref, dtw_ref,
                 dtb_ref, aneg_ref, d_ref, outw_ref, out_ref,
                 h_s, tail_s, dA_s, dBu_s,
                 *, tl, d_conv, d_state, d_inner, dt_rank, seg_dt, seg_b,
                 lane_chunk, unroll, bf16_exp):
    lt = pl.program_id(1)

    # Start of a new sequence: zero the SSM state and the conv zero-padding.
    @pl.when(lt == 0)
    def _():
        h_s[...] = jnp.zeros_like(h_s)
        tail_s[...] = jnp.zeros_like(tail_s)

    h_in = hidden_ref[0]                                     # (TL, d_model) bf16

    # ---- fused in_proj: xz = hidden @ W_in^T, split into x / z -------------
    xz = jnp.dot(h_in, wxz_ref[...],
                 preferred_element_type=jnp.float32)         # (TL, 2*d_inner) f32
    x = xz[:, :d_inner]
    z = xz[:, d_inner:]

    # ---- causal depthwise conv1d via shifted slices (VPU) + SiLU -----------
    # NOTE: the d_conv tap slices are sublane-misaligned; cost is O(d_conv *
    # TL * d_inner) VPU/XLU work per tile, small vs. the scan.
    x_ext = jnp.concatenate([tail_s[...], x], axis=0)        # (_TAIL+TL, d_inner)
    acc = jnp.zeros((tl, d_inner), jnp.float32)
    for w in range(d_conv):                                  # static unroll
        lo = _TAIL - (d_conv - 1) + w
        acc = acc + x_ext[lo:lo + tl, :] * convw_ref[w:w + 1, :]
    acc = acc + convb_ref[...]
    conv_out = acc * jax.nn.sigmoid(acc)                     # SiLU, (TL, d_inner)

    # carry the tail of x into the next L tile (left context of the conv)
    tail_s[...] = x[tl - _TAIL:, :]

    # ---- fused (lane-section-padded) x_proj: dt | B | C ---------------------
    x_dbl = jnp.dot(conv_out.astype(jnp.bfloat16), xp_ref[...],
                    preferred_element_type=jnp.float32)      # (TL, xp_pad)
    dt = x_dbl[:, :dt_rank]
    Bm = x_dbl[:, seg_dt:seg_dt + d_state]                   # lane-aligned start
    Cm = x_dbl[:, seg_dt + seg_b:seg_dt + seg_b + d_state]   # lane-aligned start

    # ---- dt_proj + delta bias, softplus (f32) ------------------------------
    delta = jnp.dot(dt.astype(jnp.bfloat16), dtw_ref[...],
                    preferred_element_type=jnp.float32) + dtb_ref[...]
    delta = _softplus(delta)                                 # (TL, d_inner)

    # ---- chunk-local scan inputs (d_inner stays on the lane axis) ----------
    dA_arg = delta[:, None, :] * aneg_ref[...][None, :, :]   # (TL, d_state, d_inner)
    if bf16_exp:
        dA_s[...] = jnp.exp(dA_arg.astype(jnp.bfloat16))     # bf16 EUP (v6e/v7x)
    else:
        dA_s[...] = jnp.exp(dA_arg).astype(dA_s.dtype)       # f32 EUP (v5e)
    dBu_s[...] = ((delta * conv_out)[:, None, :]
                  * Bm[:, :, None]).astype(dBu_s.dtype)

    # ---- sequential selective scan over this chunk (unrolled, lane-chunked) -
    n_lane = d_inner // lane_chunk
    for c in range(n_lane):
        if n_lane == 1:
            dA_v, dBu_v = dA_s, dBu_s
            h0 = h_s[...]
        else:
            lane = slice(c * lane_chunk, (c + 1) * lane_chunk)
            dA_v = dA_s.at[:, :, lane]
            dBu_v = dBu_s.at[:, :, lane]
            h0 = h_s[:, lane]

        def step(t, h, dA_v=dA_v, dBu_v=dBu_v):
            # f32 FMA on the recurrence; bf16 only for the scratch traffic.
            h = dA_v[t].astype(jnp.float32) * h + dBu_v[t].astype(jnp.float32)
            dBu_v[t] = h.astype(jnp.bfloat16)                # reuse scratch as h_t
            return h

        h_new = lax.fori_loop(0, tl, step, h0, unroll=unroll)
        if n_lane == 1:
            h_s[...] = h_new
        else:
            h_s[:, lane] = h_new

    # ---- y[t, :] = sum_n C[t, n] * h_t[n, :]  (VPU mul + sublane reduce) ---
    y = jnp.sum(dBu_s[...].astype(jnp.float32) * Cm[:, :, None], axis=1)
    y = y + d_ref[...] * conv_out                            # D skip connection
    y = y * (z * jax.nn.sigmoid(z))                          # SiLU(z) gate

    out = jnp.dot(y.astype(jnp.bfloat16), outw_ref[...],
                  preferred_element_type=jnp.float32)        # (TL, d_model)
    out_ref[...] = out[None].astype(out_ref.dtype)


def mamba_forward(hidden, in_proj_w, conv_w, conv_b, x_proj_w, dt_proj_w,
                  dt_proj_b, A_log, D, out_proj_w, *, d_state, dt_rank, d_conv,
                  seq_tile=128, bf16_exp=True):
    B, L, d_model = hidden.shape
    d_inner = conv_w.shape[0]

    tl = min(seq_tile, L)
    assert L % tl == 0 and tl % 8 == 0 and tl >= _TAIL, "L must tile by 8"
    assert d_conv - 1 <= _TAIL

    f32, bf16 = jnp.float32, jnp.bfloat16

    # Pre-transposed / fused / lane-padded parameters (matmul weights bf16).
    wxz_t = jnp.asarray(in_proj_w, f32).T.astype(bf16)             # (d_model, 2*d_inner)
    convw = jnp.asarray(conv_w, f32).T                             # (d_conv, d_inner)
    convb = jnp.asarray(conv_b, f32)[None, :]                      # (1, d_inner)

    # x_proj: pad each of dt | B | C to a 128-lane boundary so the slices in
    # the kernel start at lane offsets 0 / seg_dt / seg_dt+seg_b (aligned).
    seg_dt, seg_b, seg_c = _pad128(dt_rank), _pad128(d_state), _pad128(d_state)
    xp_pad = seg_dt + seg_b + seg_c
    xpw = jnp.asarray(x_proj_w, f32)
    xp_t = jnp.zeros((d_inner, xp_pad), f32)
    xp_t = xp_t.at[:, :dt_rank].set(xpw[:dt_rank].T)
    xp_t = xp_t.at[:, seg_dt:seg_dt + d_state].set(
        xpw[dt_rank:dt_rank + d_state].T)
    xp_t = xp_t.at[:, seg_dt + seg_b:seg_dt + seg_b + d_state].set(
        xpw[dt_rank + d_state:dt_rank + 2 * d_state].T)
    xp_t = xp_t.astype(bf16)

    dtw_t = jnp.asarray(dt_proj_w, f32).T.astype(bf16)             # (dt_rank, d_inner)
    dtb = jnp.asarray(dt_proj_b, f32)[None, :]                     # (1, d_inner)
    aneg_t = (-jnp.exp(jnp.asarray(A_log, f32))).T                 # (d_state, d_inner)
    d_par = jnp.asarray(D, f32)[None, :]                           # (1, d_inner)
    outw_t = jnp.asarray(out_proj_w, f32).T.astype(bf16)           # (d_inner, d_model)

    # Lane-chunk the scan carry so h stays <= ~16 vregs at large d_inner.
    lane_chunk = d_inner
    if d_inner > 1024:
        for cand in (1024, 512, 256, 128):
            if d_inner % cand == 0:
                lane_chunk = cand
                break
    unroll = 8                         # 4-8 per the review; tl % 8 == 0 holds

    kernel = functools.partial(
        mamba_kernel, tl=tl, d_conv=d_conv, d_state=d_state, d_inner=d_inner,
        dt_rank=dt_rank, seg_dt=seg_dt, seg_b=seg_b, lane_chunk=lane_chunk,
        unroll=unroll, bf16_exp=bf16_exp)

    def const_spec(shape):
        # Grid-invariant weight blocks: single-buffered (no point double
        # buffering something that never changes) -> halves weight VMEM.
        n = len(shape)
        return pl.BlockSpec(shape, lambda b, l, n=n: (0,) * n,
                            pipeline_mode=pl.Buffered(1))

    grid_spec = pltpu.PrefetchScalarGridSpec(
        num_scalar_prefetch=0,
        grid=(B, L // tl),
        in_specs=[
            pl.BlockSpec((1, tl, d_model), lambda b, l: (b, l, 0)),  # hidden (bf16)
            const_spec((d_model, 2 * d_inner)),                      # W_in^T (bf16)
            const_spec((d_conv, d_inner)),                           # conv weight
            const_spec((1, d_inner)),                                # conv bias
            const_spec((d_inner, xp_pad)),                           # x_proj^T padded (bf16)
            const_spec((dt_rank, d_inner)),                          # dt_proj^T (bf16)
            const_spec((1, d_inner)),                                # dt bias
            const_spec((d_state, d_inner)),                          # -exp(A_log)^T
            const_spec((1, d_inner)),                                # D
            const_spec((d_inner, d_model)),                          # out_proj^T (bf16)
        ],
        out_specs=pl.BlockSpec((1, tl, d_model), lambda b, l: (b, l, 0)),
        scratch_shapes=[
            pltpu.VMEM((d_state, d_inner), jnp.float32),             # SSM state (f32 carry)
            pltpu.VMEM((_TAIL, d_inner), jnp.float32),               # conv carry
            pltpu.VMEM((tl, d_state, d_inner), jnp.bfloat16),        # exp(delta*A) chunk
            pltpu.VMEM((tl, d_state, d_inner), jnp.bfloat16),        # delta*B*u / h_t chunk
        ],
    )

    # Explicit VMEM budget: single-buffered weights + scratch + double-buffered
    # activation I/O, with ~25% slack.  Clamped to a sane range.
    weights = (wxz_t, convw, convb, xp_t, dtw_t, dtb, aneg_t, d_par, outw_t)
    weight_bytes = sum(int(a.size) * a.dtype.itemsize for a in weights)
    scratch_bytes = (d_state * d_inner * 4 + _TAIL * d_inner * 4
                     + 2 * tl * d_state * d_inner * 2)
    io_bytes = 2 * tl * d_model * 2 + 2 * tl * d_model * 4
    vmem_limit = int(1.25 * (weight_bytes + scratch_bytes + io_bytes)) + (8 << 20)
    vmem_limit = max(32 << 20, min(vmem_limit, 100 << 20))

    return pl.pallas_call(
        kernel,
        out_shape=jax.ShapeDtypeStruct((B, L, d_model), jnp.float32),
        grid_spec=grid_spec,
        compiler_params=pltpu.CompilerParams(
            dimension_semantics=("parallel", "arbitrary"),
            vmem_limit_bytes=vmem_limit),
    )(hidden.astype(bf16), wxz_t, convw, convb, xp_t, dtw_t, dtb,
      aneg_t, d_par, outw_t)


def mamba_reference(hidden, in_proj_w, conv_w, conv_b, x_proj_w, dt_proj_w,
                    dt_proj_b, A_log, D, out_proj_w, *, d_state, dt_rank, d_conv):
    """Pure-JAX f32 reference matching mamba_inner_fn semantics (no biases)."""
    Bb, L, d_model = hidden.shape
    d_inner = conv_w.shape[0]
    xz = jnp.einsum('bld,ed->ble', hidden, in_proj_w)
    x, z = xz[..., :d_inner], xz[..., d_inner:]
    x_pad = jnp.pad(x, ((0, 0), (d_conv - 1, 0), (0, 0)))
    conv = jnp.zeros_like(x) + conv_b[None, None, :]
    for w in range(d_conv):
        conv = conv + conv_w[:, w][None, None, :] * x_pad[:, w:w + L, :]
    conv = conv * jax.nn.sigmoid(conv)
    x_dbl = jnp.einsum('bld,ed->ble', conv, x_proj_w)
    dt = x_dbl[..., :dt_rank]
    Bm = x_dbl[..., dt_rank:dt_rank + d_state]
    Cm = x_dbl[..., dt_rank + d_state:]
    delta = jnp.einsum('blr,dr->bld', dt, dt_proj_w) + dt_proj_b
    delta = _softplus(delta)
    A = -jnp.exp(A_log)
    dA = jnp.exp(jnp.einsum('bld,dn->bldn', delta, A))
    dBu = jnp.einsum('bld,bln,bld->bldn', delta, Bm, conv)
    h = jnp.zeros((Bb, d_inner, d_state))
    ys = []
    for t in range(L):
        h = dA[:, t] * h + dBu[:, t]
        ys.append(jnp.einsum('bdn,bn->bd', h, Cm[:, t]))
    y = jnp.stack(ys, axis=1)
    y = y + D[None, None, :] * conv
    y = y * (z * jax.nn.sigmoid(z))
    return jnp.einsum('bld,ed->ble', y, out_proj_w)


if __name__ == "__main__":
    # Module hyper-parameters (small, consistent with Mamba.__init__ defaults)
    d_model, d_state, d_conv, expand = 32, 16, 4, 2
    d_inner = expand * d_model                       # 64
    dt_rank = math.ceil(d_model / 16)                # 2
    B, L = 2, 8
    dt_min, dt_max, dt_init_floor = 1e-3, 1e-1, 1e-4

    key = jax.random.PRNGKey(0)
    ks = jax.random.split(key, 8)

    # Deterministic parameter init (shapes follow Mamba.__init__; bias=False)
    in_proj_w = jax.random.uniform(ks[0], (2 * d_inner, d_model),
                                   minval=-1.0, maxval=1.0) / math.sqrt(d_model)
    conv_w = jax.random.uniform(ks[1], (d_inner, d_conv),
                                minval=-1.0, maxval=1.0) / math.sqrt(d_conv)
    conv_b = jax.random.uniform(ks[2], (d_inner,),
                                minval=-1.0, maxval=1.0) / math.sqrt(d_conv)
    x_proj_w = jax.random.uniform(ks[3], (dt_rank + 2 * d_state, d_inner),
                                  minval=-1.0, maxval=1.0) / math.sqrt(d_inner)
    dt_init_std = dt_rank ** -0.5
    dt_proj_w = jax.random.uniform(ks[4], (d_inner, dt_rank),
                                   minval=-dt_init_std, maxval=dt_init_std)
    dt = jnp.exp(jax.random.uniform(ks[5], (d_inner,)) *
                 (math.log(dt_max) - math.log(dt_min)) + math.log(dt_min))
    dt = jnp.maximum(dt, dt_init_floor)
    dt_proj_b = dt + jnp.log(-jnp.expm1(-dt))        # inv_dt (softplus inverse)
    A_log = jnp.log(jnp.broadcast_to(
        jnp.arange(1, d_state + 1, dtype=jnp.float32), (d_inner, d_state)))
    D = jnp.ones((d_inner,), jnp.float32)
    out_proj_w = jax.random.uniform(ks[6], (d_model, d_inner),
                                    minval=-1.0, maxval=1.0) / math.sqrt(d_inner)

    hidden = jax.random.normal(ks[7], (B, L, d_model), dtype=jnp.float32)

    out = mamba_forward(hidden, in_proj_w, conv_w, conv_b, x_proj_w, dt_proj_w,
                        dt_proj_b, A_log, D, out_proj_w,
                        d_state=d_state, dt_rank=dt_rank, d_conv=d_conv)
    out = jax.block_until_ready(out)

    ref = mamba_reference(hidden, in_proj_w, conv_w, conv_b, x_proj_w,
                          dt_proj_w, dt_proj_b, A_log, D, out_proj_w,
                          d_state=d_state, dt_rank=dt_rank, d_conv=d_conv)
    assert out.shape == (B, L, d_model)
    # bf16 matmul operands / bf16 dA-dBu scratch with f32 accumulation.
    assert jnp.max(jnp.abs(out - ref)) < 5e-2, float(jnp.max(jnp.abs(out - ref)))

    print("KERNEL_OK")
</pallas_src>

<mosaic_0001>
module attributes {stable_mosaic.version = 11 : i64} {
  func.func @mamba_kernel(%arg0: i32, %arg1: i32, %arg2: memref<1x8x32xbf16, #tpu.memory_space<vmem>>, %arg3: memref<32x128xbf16, #tpu.memory_space<vmem>>, %arg4: memref<4x64xf32, #tpu.memory_space<vmem>>, %arg5: memref<1x64xf32, #tpu.memory_space<vmem>>, %arg6: memref<64x384xbf16, #tpu.memory_space<vmem>>, %arg7: memref<2x64xbf16, #tpu.memory_space<vmem>>, %arg8: memref<1x64xf32, #tpu.memory_space<vmem>>, %arg9: memref<16x64xf32, #tpu.memory_space<vmem>>, %arg10: memref<1x64xf32, #tpu.memory_space<vmem>>, %arg11: memref<64x32xbf16, #tpu.memory_space<vmem>>, %arg12: memref<1x8x32xf32, #tpu.memory_space<vmem>>, %arg13: memref<16x64xf32, #tpu.memory_space<vmem>>, %arg14: memref<8x64xf32, #tpu.memory_space<vmem>>, %arg15: memref<8x16x64xbf16, #tpu.memory_space<vmem>>, %arg16: memref<8x16x64xbf16, #tpu.memory_space<vmem>>) attributes {dimension_semantics = [#tpu.dimension_semantics<parallel>, #tpu.dimension_semantics<arbitrary>], iteration_bounds = array<i64: 2, 1>, scalar_prefetch = 0 : i64, scratch_operands = 4 : i64, tpu.core_type = #tpu.core_type<tc>, window_params = [{transform_indices = @transform_0, window_bounds = array<i64: 1, 8, 32>}, {pipeline_mode = #tpu.pipeline_mode<synchronous>, transform_indices = @transform_1, window_bounds = array<i64: 32, 128>}, {pipeline_mode = #tpu.pipeline_mode<synchronous>, transform_indices = @transform_2, window_bounds = array<i64: 4, 64>}, {pipeline_mode = #tpu.pipeline_mode<synchronous>, transform_indices = @transform_3, window_bounds = array<i64: 1, 64>}, {pipeline_mode = #tpu.pipeline_mode<synchronous>, transform_indices = @transform_4, window_bounds = array<i64: 64, 384>}, {pipeline_mode = #tpu.pipeline_mode<synchronous>, transform_indices = @transform_5, window_bounds = array<i64: 2, 64>}, {pipeline_mode = #tpu.pipeline_mode<synchronous>, transform_indices = @transform_6, window_bounds = array<i64: 1, 64>}, {pipeline_mode = #tpu.pipeline_mode<synchronous>, transform_indices = @transform_7, window_bounds = array<i64: 16, 64>}, {pipeline_mode = #tpu.pipeline_mode<synchronous>, transform_indices = @transform_8, window_bounds = array<i64: 1, 64>}, {pipeline_mode = #tpu.pipeline_mode<synchronous>, transform_indices = @transform_9, window_bounds = array<i64: 64, 32>}, {transform_indices = @transform_10, window_bounds = array<i64: 1, 8, 32>}]} {
    %c0_i32 = arith.constant 0 : i32
    %0 = arith.cmpi eq, %arg1, %c0_i32 : i32
    %1 = arith.extui %0 : i1 to i32
    %c0_i32_0 = arith.constant 0 : i32
    %2 = arith.cmpi ne, %1, %c0_i32_0 : i32
    scf.if %2 {
      %cst_102 = arith.constant 0.000000e+00 : f32
      %223 = vector.broadcast %cst_102 : f32 to vector<16x64xf32>
      %c0_103 = arith.constant 0 : index
      %c0_104 = arith.constant 0 : index
      %224 = vector.load %arg13[%c0_103, %c0_104] : memref<16x64xf32, #tpu.memory_space<vmem>>, vector<16x64xf32>
      tpu.vector_store %arg13[%c0_103, %c0_104], %223 {strides = array<i32>} : memref<16x64xf32, #tpu.memory_space<vmem>>, vector<16x64xf32>,
      %cst_105 = arith.constant 0.000000e+00 : f32
      %225 = vector.broadcast %cst_105 : f32 to vector<8x64xf32>
      %c0_106 = arith.constant 0 : index
      %c0_107 = arith.constant 0 : index
      %226 = vector.load %arg14[%c0_106, %c0_107] : memref<8x64xf32, #tpu.memory_space<vmem>>, vector<8x64xf32>
      tpu.vector_store %arg14[%c0_106, %c0_107], %225 {strides = array<i32>} : memref<8x64xf32, #tpu.memory_space<vmem>>, vector<8x64xf32>,
    } else {
    }
    %c0 = arith.constant 0 : index
    %c0_1 = arith.constant 0 : index
    %c0_2 = arith.constant 0 : index
    %3 = vector.load %arg2[%c0, %c0_1, %c0_2] : memref<1x8x32xbf16, #tpu.memory_space<vmem>>, vector<1x8x32xbf16>
    %4 = vector.shape_cast %3 : vector<1x8x32xbf16> to vector<8x32xbf16>
    %c0_3 = arith.constant 0 : index
    %c0_4 = arith.constant 0 : index
    %5 = vector.load %arg3[%c0_3, %c0_4] : memref<32x128xbf16, #tpu.memory_space<vmem>>, vector<32x128xbf16>
    %cst = arith.constant dense<0.000000e+00> : vector<8x128xf32>
    %6 = tpu.matmul %4, %5, %cst {dimension_numbers = #tpu.dot_dimension_numbers<[1], [0], [0], [1], [0, 0, 1, 1], [], []>} : vector<8x32xbf16>, vector<32x128xbf16>, vector<8x128xf32> -> vector<8x128xf32>
    %7 = vector.extract_strided_slice %6 {offsets = [0, 0], sizes = [8, 64], strides = [1, 1]} : vector<8x128xf32> to vector<8x64xf32>
    %8 = vector.extract_strided_slice %6 {offsets = [0, 64], sizes = [8, 64], strides = [1, 1]} : vector<8x128xf32> to vector<8x64xf32>
    %c0_5 = arith.constant 0 : index
    %c0_6 = arith.constant 0 : index
    %9 = vector.load %arg14[%c0_5, %c0_6] : memref<8x64xf32, #tpu.memory_space<vmem>>, vector<8x64xf32>
    %10 = tpu.concatenate %9, %7 in 0 : vector<8x64xf32>, vector<8x64xf32> -> vector<16x64xf32>
    %cst_7 = arith.constant 0.000000e+00 : f32
    %11 = vector.broadcast %cst_7 : f32 to vector<8x64xf32>
    %12 = vector.extract_strided_slice %10 {offsets = [5, 0], sizes = [8, 64], strides = [1, 1]} : vector<16x64xf32> to vector<8x64xf32>
    %c0_8 = arith.constant 0 : index
    %c0_9 = arith.constant 0 : index
    %13 = vector.load %arg4[%c0_8, %c0_9] : memref<4x64xf32, #tpu.memory_space<vmem>>, vector<1x64xf32>
    %14 = vector.broadcast %13 : vector<1x64xf32> to vector<8x64xf32>
    %15 = arith.mulf %12, %14 : vector<8x64xf32>
    %16 = arith.addf %11, %15 : vector<8x64xf32>
    %17 = vector.extract_strided_slice %10 {offsets = [6, 0], sizes = [8, 64], strides = [1, 1]} : vector<16x64xf32> to vector<8x64xf32>
    %c1 = arith.constant 1 : index
    %c0_10 = arith.constant 0 : index
    %18 = vector.load %arg4[%c1, %c0_10] : memref<4x64xf32, #tpu.memory_space<vmem>>, vector<1x64xf32>
    %19 = vector.broadcast %18 : vector<1x64xf32> to vector<8x64xf32>
    %20 = arith.mulf %17, %19 : vector<8x64xf32>
    %21 = arith.addf %16, %20 : vector<8x64xf32>
    %22 = vector.extract_strided_slice %10 {offsets = [7, 0], sizes = [8, 64], strides = [1, 1]} : vector<16x64xf32> to vector<8x64xf32>
    %c2 = arith.constant 2 : index
    %c0_11 = arith.constant 0 : index
    %23 = vector.load %arg4[%c2, %c0_11] : memref<4x64xf32, #tpu.memory_space<vmem>>, vector<1x64xf32>
    %24 = vector.broadcast %23 : vector<1x64xf32> to vector<8x64xf32>
    %25 = arith.mulf %22, %24 : vector<8x64xf32>
    %26 = arith.addf %21, %25 : vector<8x64xf32>
    %27 = vector.extract_strided_slice %10 {offsets = [8, 0], sizes = [8, 64], strides = [1, 1]} : vector<16x64xf32> to vector<8x64xf32>
    %c3 = arith.constant 3 : index
    %c0_12 = arith.constant 0 : index
    %28 = vector.load %arg4[%c3, %c0_12] : memref<4x64xf32, #tpu.memory_space<vmem>>, vector<1x64xf32>
    %29 = vector.broadcast %28 : vector<1x64xf32> to vector<8x64xf32>
    %30 = arith.mulf %27, %29 : vector<8x64xf32>
    %31 = arith.addf %26, %30 : vector<8x64xf32>
    %c0_13 = arith.constant 0 : index
    %c0_14 = arith.constant 0 : index
    %32 = vector.load %arg5[%c0_13, %c0_14] : memref<1x64xf32, #tpu.memory_space<vmem>>, vector<1x64xf32>
    %33 = vector.broadcast %32 : vector<1x64xf32> to vector<8x64xf32>
    %34 = arith.addf %31, %33 : vector<8x64xf32>
    %35 = arith.negf %34 : vector<8x64xf32>
    %36 = math.exp %35 : vector<8x64xf32>
    %cst_15 = arith.constant 1.000000e+00 : f32
    %37 = vector.broadcast %cst_15 : f32 to vector<8x64xf32>
    %38 = arith.addf %37, %36 : vector<8x64xf32>
    %39 = arith.divf %37, %38 : vector<8x64xf32>
    %40 = arith.mulf %34, %39 : vector<8x64xf32>
    %c0_16 = arith.constant 0 : index
    %c0_17 = arith.constant 0 : index
    %41 = vector.load %arg14[%c0_16, %c0_17] : memref<8x64xf32, #tpu.memory_space<vmem>>, vector<8x64xf32>
    tpu.vector_store %arg14[%c0_16, %c0_17], %7 {strides = array<i32>} : memref<8x64xf32, #tpu.memory_space<vmem>>, vector<8x64xf32>,
    %42 = arith.truncf %40 : vector<8x64xf32> to vector<8x64xbf16>
    %c0_18 = arith.constant 0 : index
    %c0_19 = arith.constant 0 : index
    %43 = vector.load %arg6[%c0_18, %c0_19] : memref<64x384xbf16, #tpu.memory_space<vmem>>, vector<64x384xbf16>
    %cst_20 = arith.constant dense<0.000000e+00> : vector<8x384xf32>
    %44 = tpu.matmul %42, %43, %cst_20 {dimension_numbers = #tpu.dot_dimension_numbers<[1], [0], [0], [1], [0, 0, 1, 1], [], []>} : vector<8x64xbf16>, vector<64x384xbf16>, vector<8x384xf32> -> vector<8x384xf32>
    %45 = vector.extract_strided_slice %44 {offsets = [0, 0], sizes = [8, 2], strides = [1, 1]} : vector<8x384xf32> to vector<8x2xf32>
    %46 = vector.extract_strided_slice %44 {offsets = [0, 128], sizes = [8, 16], strides = [1, 1]} : vector<8x384xf32> to vector<8x16xf32>
    %47 = vector.extract_strided_slice %44 {offsets = [0, 256], sizes = [8, 16], strides = [1, 1]} : vector<8x384xf32> to vector<8x16xf32>
    %48 = arith.truncf %45 : vector<8x2xf32> to vector<8x2xbf16>
    %c0_21 = arith.constant 0 : index
    %c0_22 = arith.constant 0 : index
    %49 = vector.load %arg7[%c0_21, %c0_22] : memref<2x64xbf16, #tpu.memory_space<vmem>>, vector<2x64xbf16>
    %cst_23 = arith.constant dense<0.000000e+00> : vector<8x64xf32>
    %50 = tpu.matmul %48, %49, %cst_23 {dimension_numbers = #tpu.dot_dimension_numbers<[1], [0], [0], [1], [0, 0, 1, 1], [], []>} : vector<8x2xbf16>, vector<2x64xbf16>, vector<8x64xf32> -> vector<8x64xf32>
    %c0_24 = arith.constant 0 : index
    %c0_25 = arith.constant 0 : index
    %51 = vector.load %arg8[%c0_24, %c0_25] : memref<1x64xf32, #tpu.memory_space<vmem>>, vector<1x64xf32>
    %52 = vector.broadcast %51 : vector<1x64xf32> to vector<8x64xf32>
    %53 = arith.addf %50, %52 : vector<8x64xf32>
    %cst_26 = arith.constant 0.000000e+00 : f32
    %54 = vector.broadcast %cst_26 : f32 to vector<8x64xf32>
    %55 = arith.maximumf %53, %54 : vector<8x64xf32>
    %56 = math.absf %53 : vector<8x64xf32>
    %cst_27 = arith.constant 0.000000e+00 : f32
    %57 = vector.broadcast %cst_27 : f32 to vector<8x64xf32>
    %58 = arith.subf %57, %56 : vector<8x64xf32>
    %59 = math.exp %58 : vector<8x64xf32>
    %60 = math.log1p %59 : vector<8x64xf32>
    %61 = arith.addf %55, %60 : vector<8x64xf32>
    %62 = vector.shape_cast %61 : vector<8x64xf32> to vector<8x1x64xf32>
    %c0_28 = arith.constant 0 : index
    %c0_29 = arith.constant 0 : index
    %63 = vector.load %arg9[%c0_28, %c0_29] : memref<16x64xf32, #tpu.memory_space<vmem>>, vector<16x64xf32>
    %64 = vector.shape_cast %63 : vector<16x64xf32> to vector<1x16x64xf32>
    %65 = vector.broadcast %62 : vector<8x1x64xf32> to vector<8x16x64xf32>
    %66 = vector.broadcast %64 : vector<1x16x64xf32> to vector<8x16x64xf32>
    %67 = arith.mulf %65, %66 : vector<8x16x64xf32>
    %68 = arith.truncf %67 : vector<8x16x64xf32> to vector<8x16x64xbf16>
    %69 = math.exp %68 : vector<8x16x64xbf16>
    %c0_30 = arith.constant 0 : index
    %c0_31 = arith.constant 0 : index
    %c0_32 = arith.constant 0 : index
    %70 = vector.load %arg15[%c0_30, %c0_31, %c0_32] : memref<8x16x64xbf16, #tpu.memory_space<vmem>>, vector<8x16x64xbf16>
    tpu.vector_store %arg15[%c0_30, %c0_31, %c0_32], %69 {strides = array<i32>} : memref<8x16x64xbf16, #tpu.memory_space<vmem>>, vector<8x16x64xbf16>,
    %71 = arith.mulf %61, %40 : vector<8x64xf32>
    %72 = vector.shape_cast %71 : vector<8x64xf32> to vector<8x1x64xf32>
    %73 = vector.shape_cast %46 : vector<8x16xf32> to vector<8x16x1xf32>
    %74 = vector.broadcast %72 : vector<8x1x64xf32> to vector<8x16x64xf32>
    %75 = vector.broadcast %73 : vector<8x16x1xf32> to vector<8x16x64xf32>
    %76 = arith.mulf %74, %75 : vector<8x16x64xf32>
    %77 = arith.truncf %76 : vector<8x16x64xf32> to vector<8x16x64xbf16>
    %c0_33 = arith.constant 0 : index
    %c0_34 = arith.constant 0 : index
    %c0_35 = arith.constant 0 : index
    %78 = vector.load %arg16[%c0_33, %c0_34, %c0_35] : memref<8x16x64xbf16, #tpu.memory_space<vmem>>, vector<8x16x64xbf16>
    tpu.vector_store %arg16[%c0_33, %c0_34, %c0_35], %77 {strides = array<i32>} : memref<8x16x64xbf16, #tpu.memory_space<vmem>>, vector<8x16x64xbf16>,
    %c0_36 = arith.constant 0 : index
    %c0_37 = arith.constant 0 : index
    %79 = vector.load %arg13[%c0_36, %c0_37] : memref<16x64xf32, #tpu.memory_space<vmem>>, vector<16x64xf32>
    %c0_i32_38 = arith.constant 0 : i32
    %80 = arith.index_cast %c0_i32_38 : i32 to index
    %c0_39 = arith.constant 0 : index
    %c0_40 = arith.constant 0 : index
    %81 = vector.load %arg15[%80, %c0_39, %c0_40] : memref<8x16x64xbf16, #tpu.memory_space<vmem>>, vector<1x16x64xbf16>
    %82 = vector.shape_cast %81 : vector<1x16x64xbf16> to vector<16x64xbf16>
    %83 = arith.extf %82 : vector<16x64xbf16> to vector<16x64xf32>
    %84 = arith.mulf %83, %79 : vector<16x64xf32>
    %85 = arith.index_cast %c0_i32_38 : i32 to index
    %c0_41 = arith.constant 0 : index
    %c0_42 = arith.constant 0 : index
    %86 = vector.load %arg16[%85, %c0_41, %c0_42] : memref<8x16x64xbf16, #tpu.memory_space<vmem>>, vector<1x16x64xbf16>
    %87 = vector.shape_cast %86 : vector<1x16x64xbf16> to vector<16x64xbf16>
    %88 = arith.extf %87 : vector<16x64xbf16> to vector<16x64xf32>
    %89 = arith.addf %84, %88 : vector<16x64xf32>
    %90 = arith.truncf %89 : vector<16x64xf32> to vector<16x64xbf16>
    %91 = arith.index_cast %c0_i32_38 : i32 to index
    %c0_43 = arith.constant 0 : index
    %c0_44 = arith.constant 0 : index
    %92 = vector.load %arg16[%91, %c0_43, %c0_44] : memref<8x16x64xbf16, #tpu.memory_space<vmem>>, vector<1x16x64xbf16>
    %93 = vector.shape_cast %92 : vector<1x16x64xbf16> to vector<16x64xbf16>
    %94 = vector.shape_cast %90 : vector<16x64xbf16> to vector<1x16x64xbf16>
    tpu.vector_store %arg16[%91, %c0_43, %c0_44], %94 {strides = array<i32>} : memref<8x16x64xbf16, #tpu.memory_space<vmem>>, vector<1x16x64xbf16>,
    %c1_i32 = arith.constant 1 : i32
    %95 = arith.index_cast %c1_i32 : i32 to index
    %c0_45 = arith.constant 0 : index
    %c0_46 = arith.constant 0 : index
    %96 = vector.load %arg15[%95, %c0_45, %c0_46] : memref<8x16x64xbf16, #tpu.memory_space<vmem>>, vector<1x16x64xbf16>
    %97 = vector.shape_cast %96 : vector<1x16x64xbf16> to vector<16x64xbf16>
    %98 = arith.extf %97 : vector<16x64xbf16> to vector<16x64xf32>
    %99 = arith.mulf %98, %89 : vector<16x64xf32>
    %100 = arith.index_cast %c1_i32 : i32 to index
    %c0_47 = arith.constant 0 : index
    %c0_48 = arith.constant 0 : index
    %101 = vector.load %arg16[%100, %c0_47, %c0_48] : memref<8x16x64xbf16, #tpu.memory_space<vmem>>, vector<1x16x64xbf16>
    %102 = vector.shape_cast %101 : vector<1x16x64xbf16> to vector<16x64xbf16>
    %103 = arith.extf %102 : vector<16x64xbf16> to vector<16x64xf32>
    %104 = arith.addf %99, %103 : vector<16x64xf32>
    %105 = arith.truncf %104 : vector<16x64xf32> to vector<16x64xbf16>
    %106 = arith.index_cast %c1_i32 : i32 to index
    %c0_49 = arith.constant 0 : index
    %c0_50 = arith.constant 0 : index
    %107 = vector.load %arg16[%106, %c0_49, %c0_50] : memref<8x16x64xbf16, #tpu.memory_space<vmem>>, vector<1x16x64xbf16>
    %108 = vector.shape_cast %107 : vector<1x16x64xbf16> to vector<16x64xbf16>
    %109 = vector.shape_cast %105 : vector<16x64xbf16> to vector<1x16x64xbf16>
    tpu.vector_store %arg16[%106, %c0_49, %c0_50], %109 {strides = array<i32>} : memref<8x16x64xbf16, #tpu.memory_space<vmem>>, vector<1x16x64xbf16>,
    %c2_i32 = arith.constant 2 : i32
    %110 = arith.index_cast %c2_i32 : i32 to index
    %c0_51 = arith.constant 0 : index
    %c0_52 = arith.constant 0 : index
    %111 = vector.load %arg15[%110, %c0_51, %c0_52] : memref<8x16x64xbf16, #tpu.memory_space<vmem>>, vector<1x16x64xbf16>
    %112 = vector.shape_cast %111 : vector<1x16x64xbf16> to vector<16x64xbf16>
    %113 = arith.extf %112 : vector<16x64xbf16> to vector<16x64xf32>
    %114 = arith.mulf %113, %104 : vector<16x64xf32>
    %115 = arith.index_cast %c2_i32 : i32 to index
    %c0_53 = arith.constant 0 : index
    %c0_54 = arith.constant 0 : index
    %116 = vector.load %arg16[%115, %c0_53, %c0_54] : memref<8x16x64xbf16, #tpu.memory_space<vmem>>, vector<1x16x64xbf16>
    %117 = vector.shape_cast %116 : vector<1x16x64xbf16> to vector<16x64xbf16>
    %118 = arith.extf %117 : vector<16x64xbf16> to vector<16x64xf32>
    %119 = arith.addf %114, %118 : vector<16x64xf32>
    %120 = arith.truncf %119 : vector<16x64xf32> to vector<16x64xbf16>
    %121 = arith.index_cast %c2_i32 : i32 to index
    %c0_55 = arith.constant 0 : index
    %c0_56 = arith.constant 0 : index
    %122 = vector.load %arg16[%121, %c0_55, %c0_56] : memref<8x16x64xbf16, #tpu.memory_space<vmem>>, vector<1x16x64xbf16>
    %123 = vector.shape_cast %122 : vector<1x16x64xbf16> to vector<16x64xbf16>
    %124 = vector.shape_cast %120 : vector<16x64xbf16> to vector<1x16x64xbf16>
    tpu.vector_store %arg16[%121, %c0_55, %c0_56], %124 {strides = array<i32>} : memref<8x16x64xbf16, #tpu.memory_space<vmem>>, vector<1x16x64xbf16>,
    %c3_i32 = arith.constant 3 : i32
    %125 = arith.index_cast %c3_i32 : i32 to index
    %c0_57 = arith.constant 0 : index
    %c0_58 = arith.constant 0 : index
    %126 = vector.load %arg15[%125, %c0_57, %c0_58] : memref<8x16x64xbf16, #tpu.memory_space<vmem>>, vector<1x16x64xbf16>
    %127 = vector.shape_cast %126 : vector<1x16x64xbf16> to vector<16x64xbf16>
    %128 = arith.extf %127 : vector<16x64xbf16> to vector<16x64xf32>
    %129 = arith.mulf %128, %119 : vector<16x64xf32>
    %130 = arith.index_cast %c3_i32 : i32 to index
    %c0_59 = arith.constant 0 : index
    %c0_60 = arith.constant 0 : index
    %131 = vector.load %arg16[%130, %c0_59, %c0_60] : memref<8x16x64xbf16, #tpu.memory_space<vmem>>, vector<1x16x64xbf16>
    %132 = vector.shape_cast %131 : vector<1x16x64xbf16> to vector<16x64xbf16>
    %133 = arith.extf %132 : vector<16x64xbf16> to vector<16x64xf32>
    %134 = arith.addf %129, %133 : vector<16x64xf32>
    %135 = arith.truncf %134 : vector<16x64xf32> to vector<16x64xbf16>
    %136 = arith.index_cast %c3_i32 : i32 to index
    %c0_61 = arith.constant 0 : index
    %c0_62 = arith.constant 0 : index
    %137 = vector.load %arg16[%136, %c0_61, %c0_62] : memref<8x16x64xbf16, #tpu.memory_space<vmem>>, vector<1x16x64xbf16>
    %138 = vector.shape_cast %137 : vector<1x16x64xbf16> to vector<16x64xbf16>
    %139 = vector.shape_cast %135 : vector<16x64xbf16> to vector<1x16x64xbf16>
    tpu.vector_store %arg16[%136, %c0_61, %c0_62], %139 {strides = array<i32>} : memref<8x16x64xbf16, #tpu.memory_space<vmem>>, vector<1x16x64xbf16>,
    %c4_i32 = arith.constant 4 : i32
    %140 = arith.index_cast %c4_i32 : i32 to index
    %c0_63 = arith.constant 0 : index
    %c0_64 = arith.constant 0 : index
    %141 = vector.load %arg15[%140, %c0_63, %c0_64] : memref<8x16x64xbf16, #tpu.memory_space<vmem>>, vector<1x16x64xbf16>
    %142 = vector.shape_cast %141 : vector<1x16x64xbf16> to vector<16x64xbf16>
    %143 = arith.extf %142 : vector<16x64xbf16> to vector<16x64xf32>
    %144 = arith.mulf %143, %134 : vector<16x64xf32>
    %145 = arith.index_cast %c4_i32 : i32 to index
    %c0_65 = arith.constant 0 : index
    %c0_66 = arith.constant 0 : index
    %146 = vector.load %arg16[%145, %c0_65, %c0_66] : memref<8x16x64xbf16, #tpu.memory_space<vmem>>, vector<1x16x64xbf16>
    %147 = vector.shape_cast %146 : vector<1x16x64xbf16> to vector<16x64xbf16>
    %148 = arith.extf %147 : vector<16x64xbf16> to vector<16x64xf32>
    %149 = arith.addf %144, %148 : vector<16x64xf32>
    %150 = arith.truncf %149 : vector<16x64xf32> to vector<16x64xbf16>
    %151 = arith.index_cast %c4_i32 : i32 to index
    %c0_67 = arith.constant 0 : index
    %c0_68 = arith.constant 0 : index
    %152 = vector.load %arg16[%151, %c0_67, %c0_68] : memref<8x16x64xbf16, #tpu.memory_space<vmem>>, vector<1x16x64xbf16>
    %153 = vector.shape_cast %152 : vector<1x16x64xbf16> to vector<16x64xbf16>
    %154 = vector.shape_cast %150 : vector<16x64xbf16> to vector<1x16x64xbf16>
    tpu.vector_store %arg16[%151, %c0_67, %c0_68], %154 {strides = array<i32>} : memref<8x16x64xbf16, #tpu.memory_space<vmem>>, vector<1x16x64xbf16>,
    %c5_i32 = arith.constant 5 : i32
    %155 = arith.index_cast %c5_i32 : i32 to index
    %c0_69 = arith.constant 0 : index
    %c0_70 = arith.constant 0 : index
    %156 = vector.load %arg15[%155, %c0_69, %c0_70] : memref<8x16x64xbf16, #tpu.memory_space<vmem>>, vector<1x16x64xbf16>
    %157 = vector.shape_cast %156 : vector<1x16x64xbf16> to vector<16x64xbf16>
    %158 = arith.extf %157 : vector<16x64xbf16> to vector<16x64xf32>
    %159 = arith.mulf %158, %149 : vector<16x64xf32>
    %160 = arith.index_cast %c5_i32 : i32 to index
    %c0_71 = arith.constant 0 : index
    %c0_72 = arith.constant 0 : index
    %161 = vector.load %arg16[%160, %c0_71, %c0_72] : memref<8x16x64xbf16, #tpu.memory_space<vmem>>, vector<1x16x64xbf16>
    %162 = vector.shape_cast %161 : vector<1x16x64xbf16> to vector<16x64xbf16>
    %163 = arith.extf %162 : vector<16x64xbf16> to vector<16x64xf32>
    %164 = arith.addf %159, %163 : vector<16x64xf32>
    %165 = arith.truncf %164 : vector<16x64xf32> to vector<16x64xbf16>
    %166 = arith.index_cast %c5_i32 : i32 to index
    %c0_73 = arith.constant 0 : index
    %c0_74 = arith.constant 0 : index
    %167 = vector.load %arg16[%166, %c0_73, %c0_74] : memref<8x16x64xbf16, #tpu.memory_space<vmem>>, vector<1x16x64xbf16>
    %168 = vector.shape_cast %167 : vector<1x16x64xbf16> to vector<16x64xbf16>
    %169 = vector.shape_cast %165 : vector<16x64xbf16> to vector<1x16x64xbf16>
    tpu.vector_store %arg16[%166, %c0_73, %c0_74], %169 {strides = array<i32>} : memref<8x16x64xbf16, #tpu.memory_space<vmem>>, vector<1x16x64xbf16>,
    %c6_i32 = arith.constant 6 : i32
    %170 = arith.index_cast %c6_i32 : i32 to index
    %c0_75 = arith.constant 0 : index
    %c0_76 = arith.constant 0 : index
    %171 = vector.load %arg15[%170, %c0_75, %c0_76] : memref<8x16x64xbf16, #tpu.memory_space<vmem>>, vector<1x16x64xbf16>
    %172 = vector.shape_cast %171 : vector<1x16x64xbf16> to vector<16x64xbf16>
    %173 = arith.extf %172 : vector<16x64xbf16> to vector<16x64xf32>
    %174 = arith.mulf %173, %164 : vector<16x64xf32>
    %175 = arith.index_cast %c6_i32 : i32 to index
    %c0_77 = arith.constant 0 : index
    %c0_78 = arith.constant 0 : index
    %176 = vector.load %arg16[%175, %c0_77, %c0_78] : memref<8x16x64xbf16, #tpu.memory_space<vmem>>, vector<1x16x64xbf16>
    %177 = vector.shape_cast %176 : vector<1x16x64xbf16> to vector<16x64xbf16>
    %178 = arith.extf %177 : vector<16x64xbf16> to vector<16x64xf32>
    %179 = arith.addf %174, %178 : vector<16x64xf32>
    %180 = arith.truncf %179 : vector<16x64xf32> to vector<16x64xbf16>
    %181 = arith.index_cast %c6_i32 : i32 to index
    %c0_79 = arith.constant 0 : index
    %c0_80 = arith.constant 0 : index
    %182 = vector.load %arg16[%181, %c0_79, %c0_80] : memref<8x16x64xbf16, #tpu.memory_space<vmem>>, vector<1x16x64xbf16>
    %183 = vector.shape_cast %182 : vector<1x16x64xbf16> to vector<16x64xbf16>
    %184 = vector.shape_cast %180 : vector<16x64xbf16> to vector<1x16x64xbf16>
    tpu.vector_store %arg16[%181, %c0_79, %c0_80], %184 {strides = array<i32>} : memref<8x16x64xbf16, #tpu.memory_space<vmem>>, vector<1x16x64xbf16>,
    %c7_i32 = arith.constant 7 : i32
    %185 = arith.index_cast %c7_i32 : i32 to index
    %c0_81 = arith.constant 0 : index
    %c0_82 = arith.constant 0 : index
    %186 = vector.load %arg15[%185, %c0_81, %c0_82] : memref<8x16x64xbf16, #tpu.memory_space<vmem>>, vector<1x16x64xbf16>
    %187 = vector.shape_cast %186 : vector<1x16x64xbf16> to vector<16x64xbf16>
    %188 = arith.extf %187 : vector<16x64xbf16> to vector<16x64xf32>
    %189 = arith.mulf %188, %179 : vector<16x64xf32>
    %190 = arith.index_cast %c7_i32 : i32 to index
    %c0_83 = arith.constant 0 : index
    %c0_84 = arith.constant 0 : index
    %191 = vector.load %arg16[%190, %c0_83, %c0_84] : memref<8x16x64xbf16, #tpu.memory_space<vmem>>, vector<1x16x64xbf16>
    %192 = vector.shape_cast %191 : vector<1x16x64xbf16> to vector<16x64xbf16>
    %193 = arith.extf %192 : vector<16x64xbf16> to vector<16x64xf32>
    %194 = arith.addf %189, %193 : vector<16x64xf32>
    %195 = arith.truncf %194 : vector<16x64xf32> to vector<16x64xbf16>
    %196 = arith.index_cast %c7_i32 : i32 to index
    %c0_85 = arith.constant 0 : index
    %c0_86 = arith.constant 0 : index
    %197 = vector.load %arg16[%196, %c0_85, %c0_86] : memref<8x16x64xbf16, #tpu.memory_space<vmem>>, vector<1x16x64xbf16>
    %198 = vector.shape_cast %197 : vector<1x16x64xbf16> to vector<16x64xbf16>
    %199 = vector.shape_cast %195 : vector<16x64xbf16> to vector<1x16x64xbf16>
    tpu.vector_store %arg16[%196, %c0_85, %c0_86], %199 {strides = array<i32>} : memref<8x16x64xbf16, #tpu.memory_space<vmem>>, vector<1x16x64xbf16>,
    %c8_i32 = arith.constant 8 : i32
    %c0_87 = arith.constant 0 : index
    %c0_88 = arith.constant 0 : index
    %200 = vector.load %arg13[%c0_87, %c0_88] : memref<16x64xf32, #tpu.memory_space<vmem>>, vector<16x64xf32>
    tpu.vector_store %arg13[%c0_87, %c0_88], %194 {strides = array<i32>} : memref<16x64xf32, #tpu.memory_space<vmem>>, vector<16x64xf32>,
    %c0_89 = arith.constant 0 : index
    %c0_90 = arith.constant 0 : index
    %c0_91 = arith.constant 0 : index
    %201 = vector.load %arg16[%c0_89, %c0_90, %c0_91] : memref<8x16x64xbf16, #tpu.memory_space<vmem>>, vector<8x16x64xbf16>
    %202 = arith.extf %201 : vector<8x16x64xbf16> to vector<8x16x64xf32>
    %203 = vector.shape_cast %47 : vector<8x16xf32> to vector<8x16x1xf32>
    %204 = vector.broadcast %203 : vector<8x16x1xf32> to vector<8x16x64xf32>
    %205 = arith.mulf %202, %204 : vector<8x16x64xf32>
    %cst_92 = arith.constant dense<0.000000e+00> : vector<8x64xf32>
    %206 = vector.multi_reduction <add>, %205, %cst_92 [1] : vector<8x16x64xf32> to vector<8x64xf32>
    %c0_93 = arith.constant 0 : index
    %c0_94 = arith.constant 0 : index
    %207 = vector.load %arg10[%c0_93, %c0_94] : memref<1x64xf32, #tpu.memory_space<vmem>>, vector<1x64xf32>
    %208 = vector.broadcast %207 : vector<1x64xf32> to vector<8x64xf32>
    %209 = arith.mulf %208, %40 : vector<8x64xf32>
    %210 = arith.addf %206, %209 : vector<8x64xf32>
    %211 = arith.negf %8 : vector<8x64xf32>
    %212 = math.exp %211 : vector<8x64xf32>
    %cst_95 = arith.constant 1.000000e+00 : f32
    %213 = vector.broadcast %cst_95 : f32 to vector<8x64xf32>
    %214 = arith.addf %213, %212 : vector<8x64xf32>
    %215 = arith.divf %213, %214 : vector<8x64xf32>
    %216 = arith.mulf %8, %215 : vector<8x64xf32>
    %217 = arith.mulf %210, %216 : vector<8x64xf32>
    %218 = arith.truncf %217 : vector<8x64xf32> to vector<8x64xbf16>
    %c0_96 = arith.constant 0 : index
    %c0_97 = arith.constant 0 : index
    %219 = vector.load %arg11[%c0_96, %c0_97] : memref<64x32xbf16, #tpu.memory_space<vmem>>, vector<64x32xbf16>
    %cst_98 = arith.constant dense<0.000000e+00> : vector<8x32xf32>
    %220 = tpu.matmul %218, %219, %cst_98 {dimension_numbers = #tpu.dot_dimension_numbers<[1], [0], [0], [1], [0, 0, 1, 1], [], []>} : vector<8x64xbf16>, vector<64x32xbf16>, vector<8x32xf32> -> vector<8x32xf32>
    %221 = vector.shape_cast %220 : vector<8x32xf32> to vector<1x8x32xf32>
    %c0_99 = arith.constant 0 : index
    %c0_100 = arith.constant 0 : index
    %c0_101 = arith.constant 0 : index
    %222 = vector.load %arg12[%c0_99, %c0_100, %c0_101] : memref<1x8x32xf32, #tpu.memory_space<vmem>>, vector<1x8x32xf32>
    tpu.vector_store %arg12[%c0_99, %c0_100, %c0_101], %221 {strides = array<i32>} : memref<1x8x32xf32, #tpu.memory_space<vmem>>, vector<1x8x32xf32>,
    return
  }
  func.func @transform_0(%arg0: i32, %arg1: i32) -> (i32, i32, i32) {
    %c0_i32 = arith.constant 0 : i32
    %c0_i32_0 = arith.constant 0 : i32
    return %arg0, %arg1, %c0_i32 : i32, i32, i32
  }
  func.func @transform_1(%arg0: i32, %arg1: i32) -> (i32, i32) {
    %c0_i32 = arith.constant 0 : i32
    %c0_i32_0 = arith.constant 0 : i32
    %c0_i32_1 = arith.constant 0 : i32
    return %c0_i32, %c0_i32_0 : i32, i32
  }
  func.func @transform_2(%arg0: i32, %arg1: i32) -> (i32, i32) {
    %c0_i32 = arith.constant 0 : i32
    %c0_i32_0 = arith.constant 0 : i32
    %c0_i32_1 = arith.constant 0 : i32
    return %c0_i32, %c0_i32_0 : i32, i32
  }
  func.func @transform_3(%arg0: i32, %arg1: i32) -> (i32, i32) {
    %c0_i32 = arith.constant 0 : i32
    %c0_i32_0 = arith.constant 0 : i32
    %c0_i32_1 = arith.constant 0 : i32
    return %c0_i32, %c0_i32_0 : i32, i32
  }
  func.func @transform_4(%arg0: i32, %arg1: i32) -> (i32, i32) {
    %c0_i32 = arith.constant 0 : i32
    %c0_i32_0 = arith.constant 0 : i32
    %c0_i32_1 = arith.constant 0 : i32
    return %c0_i32, %c0_i32_0 : i32, i32
  }
  func.func @transform_5(%arg0: i32, %arg1: i32) -> (i32, i32) {
    %c0_i32 = arith.constant 0 : i32
    %c0_i32_0 = arith.constant 0 : i32
    %c0_i32_1 = arith.constant 0 : i32
    return %c0_i32, %c0_i32_0 : i32, i32
  }
  func.func @transform_6(%arg0: i32, %arg1: i32) -> (i32, i32) {
    %c0_i32 = arith.constant 0 : i32
    %c0_i32_0 = arith.constant 0 : i32
    %c0_i32_1 = arith.constant 0 : i32
    return %c0_i32, %c0_i32_0 : i32, i32
  }
  func.func @transform_7(%arg0: i32, %arg1: i32) -> (i32, i32) {
    %c0_i32 = arith.constant 0 : i32
    %c0_i32_0 = arith.constant 0 : i32
    %c0_i32_1 = arith.constant 0 : i32
    return %c0_i32, %c0_i32_0 : i32, i32
  }
  func.func @transform_8(%arg0: i32, %arg1: i32) -> (i32, i32) {
    %c0_i32 = arith.constant 0 : i32
    %c0_i32_0 = arith.constant 0 : i32
    %c0_i32_1 = arith.constant 0 : i32
    return %c0_i32, %c0_i32_0 : i32, i32
  }
  func.func @transform_9(%arg0: i32, %arg1: i32) -> (i32, i32) {
    %c0_i32 = arith.constant 0 : i32
    %c0_i32_0 = arith.constant 0 : i32
    %c0_i32_1 = arith.constant 0 : i32
    return %c0_i32, %c0_i32_0 : i32, i32
  }
  func.func @transform_10(%arg0: i32, %arg1: i32) -> (i32, i32, i32) {
    %c0_i32 = arith.constant 0 : i32
    %c0_i32_0 = arith.constant 0 : i32
    return %arg0, %arg1, %c0_i32 : i32, i32, i32
  }
}

</mosaic_0001>

<bundles_post_ra>
// kernel: tpu_custom_call.1
= control target key start
LH: loop header
LB: loop body
LE: loop exit
PB: predicated region body
PF: predicated region fallthrough
CT: control target
= control target key end

     0   :  { %s2598_s0 = inlined_call_operand.vmem [shape: bf16[2,8,32], index: 0, kind: input, shape index: {}]   ;;  %s2599_s1 = inlined_call_operand.vmem [shape: bf16[32,128], index: 1, kind: input, shape index: {}]   ;;  %s2600_s2 = inlined_call_operand.vmem [shape: f32[4,64], index: 2, kind: input, shape index: {}]   ;;  %s2601_s3 = inlined_call_operand.vmem [shape: f32[1,64], index: 3, kind: input, shape index: {}]   ;;  %s2602_s4 = inlined_call_operand.hbm [shape: bf16[64,384], index: 4, kind: input, shape index: {}]   ;;  %s2603_s5 = inlined_call_operand.vmem [shape: bf16[2,64], index: 5, kind: input, shape index: {}]   ;;  %s2604_s6 = inlined_call_operand.vmem [shape: f32[1,64], index: 6, kind: input, shape index: {}]   ;;  %s2605_s7 = inlined_call_operand.vmem [shape: f32[16,64], index: 7, kind: input, shape index: {}]   ;;  %s2606_s8 = inlined_call_operand.vmem [shape: f32[1,64], index: 8, kind: input, shape index: {}]   ;;  %s2607_s9 = inlined_call_operand.vmem [shape: bf16[64,32], index: 9, kind: input, shape index: {}]   ;;  %s2608_s10 = inlined_call_operand.hbm [shape: f32[2,8,32], index: 10, kind: output, shape index: {}]  }
   0x1   :  { %2609 = sst [smem:[#allocation12_spill]] %s2598_s0 }
   0x2   :  { %2610 = sst [smem:[#allocation13_spill]] %s2599_s1 }
   0x3   :  { %2611 = sst [smem:[#allocation14_spill]] %s2602_s4 }
   0x4   :  { %15 = vsyncpa [#allocation7], 0 }
   0x5   :  { %16 = vsyncpa [#allocation8], 0 }
   0x6   :  { %18 = vsyncpa [#allocation8 + $0x1], 0  ;;  %s2220_s13 = smov 0   ;;  %s2222_s14 = smov 0  }
   0x7   :  { %s2224_s15 = smov 0   ;;  %s2226_s16 = smov 0  }
   0x8   :  { %s2228_s17 = smov 0   ;;  %s2230_s18 = smov 0  }
   0x9 LB: > { %s1683_s19 = sadd.s32 4294967295, %s2158_s18   ;;  %s1684_s20 = sadd.s32 4294967294, %s2158_s18   ;;  %s2158_s18 = sphi %s2230_s18, %s24_s18   ;;  %s2154_s17 = sphi %s2228_s17, %s2621_s17   ;;  %s2150_s16 = sphi %s2226_s16, %s2620_s16   ;;  %s2146_s15 = sphi %s2224_s15, %s2619_s15   ;;  %s2142_s14 = sphi %s2222_s14, %s2618_s14   ;;  %s2138_s13 = sphi %s2220_s13, %s2617_s13  }
   0xa   : > { %s36_s21 = sadd.s32 1, %s2154_s17  ;;  %s262_s22 = sadd.s32 1, %s2146_s15 }
   0xb   : > { %p38_p0 = scmp.ge.s32.totalorder %s36_s21, 2  ;;  %p272_p1 = scmp.ne.s32.totalorder %s2146_s15, %s2142_s14 }
   0xc   : > { %p273_p2 = scmp.eq.s32.totalorder %s1683_s19, 1  ;;  %p278_p3 = scmp.ne.s32.totalorder %s2142_s14, %s2138_s13 }
   0xd   : > { %s2623_s21 = smov (%p38_p0, %s36_s21), 0  ;;  %p279_p5 = scmp.eq.s32.totalorder %s1684_s20, 1 }
   0xe   : > { %p2260_p4 = por %p273_p2, %p272_p1  ;;  %s257_s24 = ssub.s32 %s2154_s17, %s2623_s21 }
   0xf   : > { %p1685_p6 = scmp.ge.s32.totalorder %s2158_s18, 1  ;;  %p260_p7 = scmp.eq.s32.totalorder %s257_s24, 0 }
  0x10   : > { %p2267_p8 = por %p279_p5, %p278_p3  ;;  %p286_p9 = scmp.lt.s32.totalorder %s2158_s18, 3 }
  0x11   : > { %s2273_s26 = scalar_select %p260_p7, %s2146_s15, %s262_s22  }
  0x12   : > { %p287_p10 = pnand %p1685_p6, %p286_p9  ;;  %p1912_p11 = scmp.eq.s32.totalorder %s1683_s19, 0 }
  0x13   : > { %s2614_s4 = sld [smem:[#allocation14_spill]]  ;;  %s2160_s30 = smov [#allocation6]  }
  0x14   : > { %p1904_p12 = pneg %p287_p10  ;;  %s308_s11 = sshll.u32 %s2160_s30, 4  ;;  %s309_s11 = int_to_ptr.vmem [resolvable:$true] %s308_s11 }
  0x15   : > { %s2161_s12 = smov 192   ;;  %s2162_s20 = smov 12  }
  0x16   : > { %p1905_p13 = pnand %p1912_p11, %p1904_p12  ;;  %349 = sbr.rel (%p287_p10) target bundleno = 785 (0x311), region = 60 }
  0x19   : > { %s306_s29 = sshll.u32 %s2614_s4, 4  ;;  %s307_s29 = int_to_ptr.hbm [resolvable:$true] %s306_s29 }
  0x1a   : > { %1907 = dma.hbm_to_vmem [thread:$0]  (!%p1905_p13), %s307_s29, 1536, %s309_s11, [#allocation7], %s2161_s12, %s2161_s12, %s2162_s20  }
  0x1b   : > { %2129 = dma.done.wait (%p1912_p11), [#allocation7], 1536  }
  0x1c   : > { %2131 = vsyncadd (%p1912_p11), [#allocation7], 4294965760  ;;  %p390_p0 = scmp.lt.s32.totalorder %s2150_s16, 1  ;;  %vm402_vm0 = vcmask 523264   ;;  %v2163_v0 = vmov 0.0   ;;  %s2615_s1 = sld [smem:[#allocation13_spill]] }
  0x1d   : > { %403 = vst.msk [vmem:[#allocation2] sm:$0xff] %vm402_vm0, %v2163_v0  ;;  %s2616_s0 = sld [smem:[#allocation12_spill]]  ;;  %vm423_vm1 = vcmask 261120   ;;  %v1992_v4 = vld [vmem:[%s2600_s2 + $0x1] ss:$0 sm:$0xff]  ;;  %vm453_vm2 = vcmask 1046528  }
  0x1e   : > { %404 = vst.msk [vmem:[#allocation2 + $0x8] sm:$0xff] %vm402_vm0, %v2163_v0  ;;  %s391_s19 = scalar_select %p390_p0, %s2150_s16, 1  ;;  %v1993_v7 = vld [vmem:[%s2600_s2 + $0x2] ss:$0 sm:$0xff]  ;;  %v1991_v8 = vld [vmem:[%s2600_s2] ss:$0 sm:$0xff] }
  0x1f   : > { %405 = vst.msk [vmem:[#allocation3] sm:$0xff] %vm402_vm0, %v2163_v0  ;;  %v1994_v11 = vld [vmem:[%s2600_s2 + $0x3] ss:$0 sm:$0xff]  ;;  %v1789_v13 = vld [vmem:[#allocation6 + $0x50] sm:$0xf0]  ;;  %vm467_vm3 = vcmask 1045504  }
  0x20   : > { %s1691_s29 = sshll.u32 %s391_s19, 2  ;;  %v1741_v12 = vld [vmem:[#allocation6 + $0x48] sm:$0xf]  ;;  %v1788_v14 = vld [vmem:[#allocation6 + $0x4c] sm:$0xf]  ;;  %vm845_vm12 = vcmask 1042432  }
  0x21   : > { %v1742_v15 = vor.u32 %v1789_v13, %v1741_v12  ;;  %v1743_v16 = vld [vmem:[#allocation6 + $0x54] sm:$0xf0]  ;;  %v1749_v17 = vld [vmem:[#allocation6 + $0x50] sm:$0xf]  ;;  %v1790_v18 = vld [vmem:[#allocation6 + $0x58] sm:$0xf0] }
  0x22   : > { %v1778_v1 = vld [vmem:[%s2615_s1 + $0x8] sm:$0xff]  ;;  %v1777_v2 = vld [vmem:[%s2615_s1] sm:$0xff]  ;;  %v1746_v20 = vor.u32 %v1788_v14, %v1743_v16  ;;  %v1750_v21 = vor.u32 %v1790_v18, %v1749_v17  ;;  %v1786_v23 = vld [vmem:[#allocation6 + $0x38] sm:$0xf0]  ;;  %vm672_vm13 = vcmask 1040384   ;;  %vm668_vm14 = vcmask 15360  }
  0x23   : > { %433 = vmatpush.bf16.msra.mxu0 %v1778_v1  ;;  %s396_s12 = scalar_lea.vmem %s2616_s0, %s1691_s29  ;;  %v1729_v22 = vld [vmem:[#allocation6 + $0x30] sm:$0xf]  ;;  %v1785_v24 = vld [vmem:[#allocation6 + $0x34] sm:$0xf]  ;;  %v1731_v29 = vld [vmem:[#allocation6 + $0x3c] sm:$0xf0]  ;;  %627 = vmatpush.bf16.msra.mxu1 %v1742_v15 }
  0x24   : > { %v406_v3 = vld [vmem:[%s396_s12] sm:$0xf]  ;;  %v1737_v30 = vld [vmem:[#allocation6 + $0x38] sm:$0xf]  ;;  %640 = vmatpush.bf16.msra.mxu2 %v1746_v20  ;;  %v1730_v32 = vor.u32 %v1786_v23, %v1729_v22  ;;  %v1734_v33 = vor.u32 %v1785_v24, %v1731_v29  ;;  %v1787_v34 = vld [vmem:[#allocation6 + $0x40] sm:$0xf0]  ;;  %653 = vmatpush.bf16.msra.mxu3 %v1750_v21 }
  0x25   : > { %v1738_v38 = vor.u32 %v1787_v34, %v1737_v30  ;;  %v1717_v39 = vld [vmem:[#allocation6 + $0x18] sm:$0xf]  ;;  %v1783_v40 = vld [vmem:[#allocation6 + $0x20] sm:$0xf0]  ;;  %v1782_v41 = vld [vmem:[#allocation6 + $0x1c] sm:$0xf] }
  0x26   : > { %v440_v5 = vld [vmem:[#allocation3] sm:$0xff]  ;;  %v1719_v42 = vld [vmem:[#allocation6 + $0x24] sm:$0xf0]  ;;  %v1725_v43 = vld [vmem:[#allocation6 + $0x20] sm:$0xf]  ;;  %v1718_v48 = vor.u32 %v1783_v40, %v1717_v39  ;;  %s2164_s20 = smov 64  }
  0x27   : > { %434 = vmatpush.bf16.msra.mxu0 %v1777_v2  ;;  %v449_v6 = vmul.f32 %v1992_v4, %v440_v5  ;;  %v463_v10 = vmul.f32 %v1993_v7, %v440_v5  ;;  %v443_v25 = vmul.f32 %v1991_v8, %v440_v5  ;;  %v1784_v46 = vld [vmem:[#allocation6 + $0x28] sm:$0xf0]  ;;  %628 = vmatpush.bf16.msra.mxu1 %v1730_v32  ;;  %v1705_v50 = vld [vmem:[#allocation6] sm:$0xf]  ;;  %v1995_v52 = vld [vmem:[%s2601_s3] ss:$0 sm:$0xff] }
  0x28   : > { %641 = vmatpush.bf16.msra.mxu2 %v1734_v33  ;;  %v1722_v49 = vor.u32 %v1782_v41, %v1719_v42  ;;  %654 = vmatpush.bf16.msra.mxu3 %v1738_v38  ;;  %v1726_v54 = vor.u32 %v1784_v46, %v1725_v43  ;;  %v1780_v55 = vld [vmem:[#allocation6 + $0x8] sm:$0xf0]  ;;  %v1779_v56 = vld [vmem:[#allocation6 + $0x4] sm:$0xf]  ;;  %v1707_v57 = vld [vmem:[#allocation6 + $0xc] sm:$0xf0] }
  0x29   : > { %v454_v9 = vrot.slane %v449_v6, 1  ;;  %v468_v28 = vrot.slane %v463_v10, 2  ;;  %v1713_v60 = vld [vmem:[#allocation6 + $0x8] sm:$0xf]  ;;  %v1781_v61 = vld [vmem:[#allocation6 + $0x10] sm:$0xf0]  ;;  %v1706_v0 = vor.u32 %v1780_v55, %v1705_v50  ;;  %v1710_v1 = vor.u32 %v1779_v56, %v1707_v57 }
  0x2a   : > { %1700 = vmatmul.msk.bf16.vlgmr.msra.gmra.mxu0 %vm423_vm1, %v406_v3  ;;  %v1714_v3 = vor.u32 %v1781_v61, %v1713_v60  ;;  %s387_s29 = sand.u32 1, %s2142_s14   ;;  %s1774_s4 = sshll.u32 %s2150_s16, 3 }
  0x2b   : > { %629 = vmatpush.bf16.msra.mxu1 %v1718_v48  ;;  %s1690_s30 = sshll.u32 %s387_s29, 3  ;;  %s1584_s27 = scalar_lea.sflag [#allocation8], %s387_s29 }
  0x2c   : > { %642 = vmatpush.bf16.msra.mxu2 %v1722_v49  ;;  %655 = vmatpush.bf16.msra.mxu3 %v1726_v54  ;;  %s389_s22 = scalar_lea.vmem [#allocation9], %s1690_s30 }
  0x2d   : > { %s1597_s24 = sshll.u32 %s389_s22, 4  ;;  %s1598_s24 = int_to_ptr.vmem [resolvable:$true] %s1597_s24 }
  0x2f   : > { %630 = vmatpush.bf16.msra.mxu1 %v1706_v0 }
  0x30   : > { %643 = vmatpush.bf16.msra.mxu2 %v1710_v1  ;;  %656 = vmatpush.bf16.msra.mxu3 %v1714_v3 }
  0xa7   : > { %v2305_v19 = vpop.f32.mrf.mxu0 }
  0xa8   : > { %v450_v26 = vmul.f32 %v1992_v4, %v2305_v19  ;;  %v464_v27 = vmul.f32 %v1993_v7, %v2305_v19  ;;  %530 = vst.msk [vmem:[#allocation3] sm:$0xff] %vm402_vm0, %v2305_v19  ;;  %v477_v31 = vmul.f32 %v1994_v11, %v2305_v19  ;;  %v444_v35 = vmul.f32 %v1991_v8, %v2305_v19 }
  0xaa   : > { %v455_v36 = vrot.slane %v450_v26, 1  ;;  %v469_v37 = vrot.slane %v464_v27, 2  ;;  %v479_v47 = vrot.slane %v477_v31, 3 }
  0xac   : > { %v456_v44 = vsel %vm453_vm2, %v454_v9, %v455_v36  ;;  %v460_v45 = vadd.f32 %v455_v36, %v444_v35  ;;  %v470_v58 = vsel %vm467_vm3, %v468_v28, %v469_v37 }
  0xad   : > { %v459_v51 = vadd.f32 %v456_v44, %v443_v25  ;;  %v860_v44 = vlaneseq }
  0xae   : > { %v474_v53 = vadd.f32 %v469_v37, %v460_v45  ;;  %v663_v45 = vld [vmem:[%s2603_s5] sm:$0x1] }
  0xaf   : > { %v438_v59 = vpop.f32.mrf.mxu0  ;;  %v473_v62 = vadd.f32 %v470_v58, %v459_v51  ;;  %v674_v46 = vsel %vm672_vm13, %v663_v45, 0  ;;  %vm1539_vm13 = vcmask 1047559  }
  0xb0   : > { %v482_v63 = vadd.f32 %v479_v47, %v474_v53  ;;  %683 = vmatpush.bf16.msrb.mxu0 %v674_v46 }
  0xb1   : > { %v481_v2 = vadd.f32 %v479_v47, %v473_v62  ;;  %v2334_v47 = vshrl.u32 %v860_v44, 7 }
  0xb2   : > { %v488_v4 = vadd.f32 %v1995_v52, %v482_v63  ;;  %v1755_v63 = vmul.f32 -1.442695, %v2305_v19 }
  0xb3   : > { %v487_v5 = vadd.f32 %v1995_v52, %v481_v2  ;;  %1972 = vset.pattern.permute.xlu2 %v2334_v47  ;;  %1970 = vset.pattern.permute.xlu1 %v2334_v47  ;;  %v2342_v56 = vadd.s32 8, %v2334_v47 }
  0xb4   : > { %v1702_v7 = vmul.f32 -1.442695, %v488_v4  ;;  %1968 = vset.pattern.permute.xlu0 %v2334_v47 }
  0xb5   : > { %v1701_v6 = vmul.f32 -1.442695, %v487_v5 }
  0xb7   : > { %1998 = vpow2.f32 %v1701_v6 }
  0xb8   : > { %2000 = vpow2.f32 %v1702_v7 }
  0xbd   : > { %v1999_v8 = vpop.eup %1998 }
  0xbe   : > { %v2001_v9 = vpop.eup %2000  ;;  %v495_v10 = vadd.f32 1.0, %v1999_v8 }
  0xbf   : > { %v496_v11 = vadd.f32 1.0, %v2001_v9 }
  0xc0   : > { %2002 = vrcp.f32 %v495_v10  ;;  %v508_v17 = vand.u32 2147483648, %v495_v10  ;;  %v506_v21 = vand.u32 2147483647, %v495_v10  ;;  %vm502_vm6 = vweird.f32 %v495_v10 }
  0xc1   : > { %2004 = vrcp.f32 %v496_v11  ;;  %v523_v22 = vand.u32 2147483648, %v496_v11  ;;  %v521_v24 = vand.u32 2147483647, %v496_v11  ;;  %vm517_vm8 = vweird.f32 %v496_v11 }
  0xc2   : > { %v509_v26 = vor.u32 1.1754944e-38, %v508_v17  ;;  %vm507_vm9 = vcmp.eq.f32.partialorder %v506_v21, 8.507059e+37  ;;  %2006 = vpow2.f32 %v1755_v63 }
  0xc3   : > { %v524_v29 = vor.u32 1.1754944e-38, %v523_v22  ;;  %vm522_vm11 = vcmp.eq.f32.partialorder %v521_v24, 8.507059e+37 }
  0xc6   : > { %v2003_v12 = vpop.eup %2002 }
  0xc7   : > { %v2005_v13 = vpop.eup %2004  ;;  %v498_v14 = vmul.f32 %v2003_v12, %v495_v10  ;;  %vm503_vm4 = vweird.f32 %v2003_v12 }
  0xc8   : > { %v513_v15 = vmul.f32 %v2005_v13, %v496_v11  ;;  %vm518_vm5 = vweird.f32 %v2005_v13  ;;  %vm504_vm7 = vmor %vm502_vm6, %vm503_vm4  ;;  %v2007_v0 = vpop.eup %2006  ;;  %vm826_vm6 = vcmask 519168  }
  0xc9   : > { %v499_v16 = vsub.f32 1.0, %v498_v14  ;;  %vm519_vm10 = vmor %vm517_vm8, %vm518_vm5  ;;  %v1431_v3 = vadd.f32 1.0, %v2007_v0  ;;  %vm1524_vm8 = vcmask 1042434  }
  0xca   : > { %v514_v18 = vsub.f32 1.0, %v513_v15 }
  0xcb   : > { %v500_v20 = vmul.f32 %v2003_v12, %v499_v16  ;;  %2008 = vrcp.f32 %v1431_v3  ;;  %vm1437_vm2 = vweird.f32 %v1431_v3 }
  0xcc   : > { %v515_v23 = vmul.f32 %v2005_v13, %v514_v18 }
  0xcd   : > { %v501_v25 = vadd.f32 %v2003_v12, %v500_v20 }
  0xce   : > { %v516_v27 = vadd.f32 %v2005_v13, %v515_v23 }
  0xcf   : > { %v505_v28 = vsel %vm504_vm7, %v2003_v12, %v501_v25  ;;  %v1443_v12 = vand.u32 2147483648, %v1431_v3  ;;  %vm1521_vm7 = vcmask 1041409  }
  0xd0   : > { %v510_v30 = vsel %vm507_vm9, %v509_v26, %v505_v28  ;;  %v520_v31 = vsel %vm519_vm10, %v2005_v13, %v516_v27  ;;  %v1441_v13 = vand.u32 2147483647, %v1431_v3  ;;  %vm1527_vm9 = vcmask 1043459  }
  0xd1   : > { %v525_v32 = vsel %vm522_vm11, %v524_v29, %v520_v31  ;;  %v2318_v33 = vmul.f32 %v510_v30, %v487_v5  ;;  %v2009_v5 = vpop.eup %2008  ;;  %v1444_v15 = vor.u32 1.1754944e-38, %v1443_v12  ;;  %vm1530_vm10 = vcmask 1044484  }
  0xd2   : > { %v2320_v34 = vmul.f32 %v525_v32, %v488_v4  ;;  %v1433_v6 = vmul.f32 %v2009_v5, %v1431_v3  ;;  %vm1438_vm15 = vweird.f32 %v2009_v5  ;;  %vm1442_vm4 = vcmp.eq.f32.partialorder %v1441_v13, 8.507059e+37 }
  0xd3   : > { %v846_v35 = vrot.slane %v2318_v33, 5  ;;  %vm1439_vm3 = vmor %vm1437_vm2, %vm1438_vm15  ;;  %vm1533_vm11 = vcmask 1045509  }
  0xd4   : > { %v531_v36 = vpack.c.bf16 %v2320_v34, %v2318_v33  ;;  %v847_v37 = vrot.slane %v2320_v34, 5  ;;  %v1434_v8 = vsub.f32 1.0, %v1433_v6 }
  0xd6   : > { %v549_v38 = vshrl.u32 %v531_v36, 16  ;;  %v552_v39 = vshll.u32 %v531_v36, 16  ;;  %v2326_v40 = vsel %vm845_vm12, %v846_v35, %v847_v37  ;;  %v1435_v9 = vmul.f32 %v2009_v5, %v1434_v8 }
  0xd7   : > { %vm1536_vm12 = vcmask 1046534  }
  0xd8   : > { %v551_v41 = vrot.slane %v549_v38, 2  ;;  %v554_v42 = vrot.slane %v552_v39, 3  ;;  %v1436_v11 = vadd.f32 %v2009_v5, %v1435_v9 }
  0xda   : > { %v555_v43 = vor.u32 %v554_v42, %v551_v41  ;;  %v1440_v14 = vsel %vm1439_vm3, %v2009_v5, %v1436_v11 }
  0xdb   : > { %v1445_v17 = vsel %vm1442_vm4, %v1444_v15, %v1440_v14 }
  0xdc   : > { %1751 = vmatmul.msk.bf16.vlgmr.msra.gmra.mxu1 %vm402_vm0, %v555_v43  ;;  %1752 = vmatmul.msk.bf16.vlgmr.msra.gmra.mxu2 %vm402_vm0, %v555_v43  ;;  %v2366_v18 = vmul.f32 %v1445_v17, %v2305_v19  ;;  %v1996_v19 = vld [vmem:[%s2604_s6] ss:$0 sm:$0xff] }
  0xdd   : > { %1753 = vmatmul.msk.bf16.vlgmr.msra.gmra.mxu3 %vm402_vm0, %v555_v43 }
  0xde   : > { %v1450_v20 = vrot.slane %v2366_v18, 2  ;;  %v1452_v22 = vrot.slane %v2366_v18, 4  ;;  %v1455_v25 = vrot.slane %v2366_v18, 7  ;;  %v1449_v39 = vrot.slane %v2366_v18, 1 }
  0xdf   : > { %v1454_v17 = vrot.slane %v2366_v18, 6 }
 0x159   : > { %v632_v48 = vpop.f32.mrf.mxu1 }
 0x15a   : > { %v662_v49 = vpack.c.bf16 %v632_v48, %v632_v48 }
 0x15c   : > { %1754 = vmatmul.msk.bf16.vlgmr.msrb.gmra.mxu0 %vm668_vm14, %v662_v49 }
 0x15f   : > { %v645_v50 = vpop.f32.mrf.mxu2 }
 0x160   : > { %v2339_v51 = vpop.f32.mrf.mxu3  ;;  %v885_v52 = vperm.slane %v645_v50, 2  ;;  %v872_v53 = vperm.slane %v645_v50, 1  ;;  %v859_v54 = vperm.slane %v645_v50, 0  ;;  %v898_v59 = vperm.slane %v645_v50, 3 }
 0x161   : > { %v634_v55 = vpop.f32.mrf.mxu1  ;;  %v911_v60 = vperm.slane %v645_v50, 4  ;;  %v924_v61 = vperm.slane %v645_v50, 5  ;;  %v937_v62 = vperm.slane %v645_v50, 6  ;;  %v950_v1 = vperm.slane %v645_v50, 7 }
 0x162   : > { %890 = vperm.xlu2 %1972, %v885_v52   ;;  %877 = vperm.xlu1 %1970, %v872_v53   ;;  %v1231_v2 = vperm.slane %v2339_v51, 2  ;;  %v1218_v4 = vperm.slane %v2339_v51, 1  ;;  %v1244_v7 = vperm.slane %v2339_v51, 3  ;;  %v1205_v10 = vperm.slane %v2339_v51, 0 }
 0x163   : > { %864 = vperm.xlu0 %1968, %v859_v54   ;;  %v1283_v16 = vperm.slane %v2339_v51, 6  ;;  %v1257_v21 = vperm.slane %v2339_v51, 4  ;;  %v1270_v23 = vperm.slane %v2339_v51, 5  ;;  %v1296_v32 = vperm.slane %v2339_v51, 7  ;;  %v712_v51 = vld [vmem:[%s2605_s7] sm:$0xff] }
 0x164   : > { %v1451_v55 = vrot.slane %v2366_v18, 3 }
 0x167   : > { %v647_v57 = vpop.f32.mrf.mxu2 }
 0x168   : > { %v660_v58 = vpop.f32.mrf.mxu3 }
 0x16a   : > { %1973 = vset.pattern.permute.xlu2 %v2342_v56  ;;  %1971 = vset.pattern.permute.xlu1 %v2342_v56 }
 0x16b   : > { %1969 = vset.pattern.permute.xlu0 %v2342_v56 }
 0x172   : > { %896 = vperm.xlu2 %1973, %v885_v52   ;;  %883 = vperm.xlu1 %1971, %v872_v53   ;;  %v713_v53 = vld [vmem:[%s2605_s7 + $0x8] sm:$0xff] }
 0x173   : > { %870 = vperm.xlu0 %1969, %v859_v54  }
 0x17a   : > { %909 = vperm.xlu2 %1973, %v898_v59   ;;  %1974 = vset.pattern.permute.xlu1 %v2334_v47 }
 0x17b   : > { %1975 = vset.pattern.permute.xlu0 %v2334_v47 }
 0x182   : > { %1977 = vset.pattern.permute.xlu2 %v2334_v47  ;;  %903 = vperm.xlu1 %1974, %v898_v59  }
 0x183   : > { %916 = vperm.xlu0 %1975, %v911_v60  }
 0x18a   : > { %929 = vperm.xlu2 %1977, %v924_v61   ;;  %1976 = vset.pattern.permute.xlu1 %v2342_v56 }
 0x18b   : > { %1978 = vset.pattern.permute.xlu0 %v2342_v56 }
 0x192   : > { %942 = vperm.xlu2 %1977, %v937_v62   ;;  %922 = vperm.xlu1 %1976, %v911_v60  }
 0x193   : > { %948 = vperm.xlu0 %1978, %v937_v62  }
 0x19a   : > { %1980 = vset.pattern.permute.xlu2 %v2342_v56  ;;  %935 = vperm.xlu1 %1976, %v924_v61  }
 0x19b   : > { %1981 = vset.pattern.permute.xlu0 %v2334_v47 }
 0x1a2   : > { %961 = vperm.xlu2 %1980, %v950_v1   ;;  %1979 = vset.pattern.permute.xlu1 %v2334_v47 }
 0x1a3   : > { %1236 = vperm.xlu0 %1981, %v1231_v2  }
 0x1aa   : > { %1229 = vperm.xlu2 %1980, %v1218_v4   ;;  %955 = vperm.xlu1 %1979, %v950_v1  }
 0x1ab   : > { %1984 = vset.pattern.permute.xlu0 %v2342_v56 }
 0x1b2   : > { %1983 = vset.pattern.permute.xlu2 %v2334_v47  ;;  %1223 = vperm.xlu1 %1979, %v1218_v4  }
 0x1b3   : > { %1255 = vperm.xlu0 %1984, %v1244_v7  }
 0x1ba   : > { %1210 = vperm.xlu2 %1983, %v1205_v10   ;;  %1982 = vset.pattern.permute.xlu1 %v2342_v56 }
 0x1bb   : > { %1987 = vset.pattern.permute.xlu0 %v2334_v47 }
 0x1bc   : > { %v2387_v46 = vpop.permute.xlu2 %890 }
 0x1c2   : > { %1249 = vperm.xlu2 %1983, %v1244_v7   ;;  %1242 = vperm.xlu1 %1982, %v1231_v2  }
 0x1c3   : > { %1288 = vperm.xlu0 %1987, %v1283_v16  }
 0x1ca   : > { %1986 = vset.pattern.permute.xlu2 %v2342_v56  ;;  %1216 = vperm.xlu1 %1982, %v1205_v10  }
 0x1cb   : > { %1460 = vrot.lane.b32.xlu0 %v1450_v20, %s2164_s20 }
 0x1cc   : > { %1990 = vset.pattern.permute.xlu0 %v2342_v56  ;;  %v2406_v3 = vpop.permute.xlu2 %896 }
 0x1d2   : > { %1268 = vperm.xlu2 %1986, %v1257_v21   ;;  %1985 = vset.pattern.permute.xlu1 %v2334_v47 }
 0x1d3   : > { %1464 = vrot.lane.b32.xlu0 %v1452_v22, %s2164_s20 }
 0x1d4   : > { %v2408_v4 = vpop.permute.xlu1 %877 }
 0x1d9   : > { %v685_v24 = vpop.f32.mrf.mxu0 }
 0x1da   : > { %v686_v26 = vadd.f32 %v1996_v19, %v685_v24  ;;  %1281 = vperm.xlu2 %1986, %v1270_v23   ;;  %1262 = vperm.xlu1 %1985, %v1257_v21   ;;  %v1453_v19 = vrot.slane %v2366_v18, 5 }
 0x1db   : > { %1470 = vrot.lane.b32.xlu0 %v1455_v25, %s2164_s20 }
 0x1dc   : > { %v690_v27 = vand.u32 2147483647, %v686_v26  ;;  %v689_v44 = vmax.f32 %v686_v26, 0.0 }
 0x1de   : > { %v691_v28 = vsub.f32 0.0, %v690_v27 }
 0x1e0   : > { %v692_v29 = vmul.f32 1.442695, %v691_v28 }
 0x1e1   : > { %v687_v30 = vpop.f32.mrf.mxu0 }
 0x1e2   : > { %2010 = vpow2.f32 %v692_v29  ;;  %1989 = vset.pattern.permute.xlu2 %v2334_v47  ;;  %1275 = vperm.xlu1 %1985, %v1270_v23  }
 0x1e8   : > { %v2011_v31 = vpop.eup %2010 }
 0x1e9   : > { %v694_v35 = vadd.f32 1.0, %v2011_v31  ;;  %v697_v36 = vmul.f32 -0.5, %v2011_v31  ;;  %v700_v38 = vand.u32 2147483647, %v2011_v31 }
 0x1ea   : > { %1301 = vperm.xlu2 %1989, %v1296_v32   ;;  %1988 = vset.pattern.permute.xlu1 %v2342_v56 }
 0x1eb   : > { %2012 = vlog2.f32 %v694_v35  ;;  %v698_v37 = vadd.f32 1.0, %v697_v36  ;;  %vm701_vm5 = vcmp.lt.f32.partialorder %v700_v38, 0.0004427343 }
 0x1ed   : > { %v699_v43 = vmul.f32 %v2011_v31, %v698_v37 }
 0x1f1   : > { %v2013_v41 = vpop.eup %2012 }
 0x1f2   : > { %v696_v42 = vmul.f32 0.6931472, %v2013_v41  ;;  %1458 = vrot.lane.b32.xlu2 %v1449_v39, %s2164_s20  ;;  %1294 = vperm.xlu1 %1988, %v1283_v16  }
 0x1f4   : > { %v702_v45 = vsel %vm701_vm5, %v699_v43, %v696_v42  ;;  %v2416_v42 = vpop.permute.xlu1 %883 }
 0x1f5   : > { %v2389_v47 = vadd.f32 %v702_v45, %v689_v44 }
 0x1f7   : > { %v705_v48 = vrot.slane %v2389_v47, 1  ;;  %v706_v49 = vrot.slane %v2389_v47, 2  ;;  %v707_v50 = vrot.slane %v2389_v47, 3  ;;  %v708_v52 = vrot.slane %v2389_v47, 4 }
 0x1f8   : > { %v714_v54 = vperm.slane %v2389_v47, 0  ;;  %v709_v58 = vrot.slane %v2389_v47, 5  ;;  %v710_v0 = vrot.slane %v2389_v47, 6  ;;  %v711_v5 = vrot.slane %v2389_v47, 7 }
 0x1f9   : > { %v715_v56 = vperm.slane %v705_v48, 0  ;;  %v716_v57 = vperm.slane %v706_v49, 0  ;;  %v717_v59 = vperm.slane %v707_v50, 0  ;;  %v718_v1 = vperm.slane %v708_v52, 0  ;;  %v2418_v49 = vpop.permute.xlu2 %909 }
 0x1fa   : > { %v730_v60 = vmul.f32 %v714_v54, %v712_v51  ;;  %1462 = vrot.lane.b32.xlu2 %v1451_v55, %s2164_s20  ;;  %1307 = vperm.xlu1 %1988, %v1296_v32   ;;  %v731_v61 = vmul.f32 %v714_v54, %v713_v53  ;;  %v719_v7 = vperm.slane %v709_v58, 0  ;;  %v720_v14 = vperm.slane %v710_v0, 0 }
 0x1fb   : > { %v732_v62 = vmul.f32 %v715_v56, %v712_v51  ;;  %v733_v63 = vmul.f32 %v715_v56, %v713_v53  ;;  %v734_v2 = vmul.f32 %v716_v57, %v712_v51  ;;  %v735_v6 = vmul.f32 %v716_v57, %v713_v53 }
 0x1fc   : > { %v736_v8 = vmul.f32 %v717_v59, %v712_v51  ;;  %v746_v9 = vpack.c.bf16 %v730_v60, %v730_v60  ;;  %v737_v10 = vmul.f32 %v717_v59, %v713_v53  ;;  %v747_v11 = vpack.c.bf16 %v731_v61, %v731_v61 }
 0x1fd   : > { %v748_v12 = vpack.c.bf16 %v732_v62, %v732_v62  ;;  %v749_v13 = vpack.c.bf16 %v733_v63, %v733_v63  ;;  %v738_v15 = vmul.f32 %v718_v1, %v712_v51  ;;  %v750_v16 = vpack.c.bf16 %v734_v2, %v734_v2  ;;  %v2421_v62 = vpop.permute.xlu0 %864 }
 0x1fe   : > { %v721_v20 = vperm.slane %v711_v5, 0  ;;  %v739_v21 = vmul.f32 %v718_v1, %v713_v53  ;;  %v751_v22 = vpack.c.bf16 %v735_v6, %v735_v6  ;;  %v740_v23 = vmul.f32 %v719_v7, %v712_v51 }
 0x1ff   : > { %v741_v24 = vmul.f32 %v719_v7, %v713_v53  ;;  %v752_v25 = vpack.c.bf16 %v736_v8, %v736_v8  ;;  %v762_v26 = vunpack.c.l.bf16 %v746_v9  ;;  %v753_v27 = vpack.c.bf16 %v737_v10, %v737_v10  ;;  %v2427_v9 = vpop.permute.xlu1 %903 }
 0x200   : > { %v763_v28 = vunpack.c.l.bf16 %v747_v11  ;;  %v764_v29 = vunpack.c.l.bf16 %v748_v12  ;;  %v765_v30 = vunpack.c.l.bf16 %v749_v13  ;;  %v742_v31 = vmul.f32 %v720_v14, %v712_v51 }
 0x201   : > { %v743_v32 = vmul.f32 %v720_v14, %v713_v53  ;;  %v754_v35 = vpack.c.bf16 %v738_v15, %v738_v15  ;;  %v766_v36 = vunpack.c.l.bf16 %v750_v16  ;;  %v744_v37 = vmul.f32 %v721_v20, %v712_v51 }
 0x202   : > { %1468 = vrot.lane.b32.xlu2 %v1454_v17, %s2164_s20  ;;  %1456 = vrot.lane.b32.xlu1 %v2366_v18, %s2164_s20  ;;  %v745_v38 = vmul.f32 %v721_v20, %v713_v53  ;;  %v755_v39 = vpack.c.bf16 %v739_v21, %v739_v21  ;;  %v767_v41 = vunpack.c.l.bf16 %v751_v22  ;;  %v756_v43 = vpack.c.bf16 %v740_v23, %v740_v23  ;;  %v2429_v17 = vpop.permute.xlu2 %929 }
 0x203   : > { %v757_v44 = vpack.c.bf16 %v741_v24, %v741_v24  ;;  %v768_v45 = vunpack.c.l.bf16 %v752_v25  ;;  %v778_v48 = vmul.f32 1.442695, %v762_v26  ;;  %v769_v18 = vunpack.c.l.bf16 %v753_v27 }
 0x204   : > { %v780_v50 = vmul.f32 1.442695, %v763_v28  ;;  %v782_v52 = vmul.f32 1.442695, %v764_v29  ;;  %v784_v54 = vmul.f32 1.442695, %v765_v30  ;;  %v758_v55 = vpack.c.bf16 %v742_v31, %v742_v31 }
 0x205   : > { %v770_v56 = vunpack.c.l.bf16 %v754_v35  ;;  %2014 = vpow2.f32 %v778_v48  ;;  %v786_v57 = vmul.f32 1.442695, %v766_v36  ;;  %v759_v51 = vpack.c.bf16 %v743_v32, %v743_v32  ;;  %v871_v31 = vpop.permute.xlu0 %870 }
 0x206   : > { %v771_v53 = vunpack.c.l.bf16 %v755_v39  ;;  %2016 = vpow2.f32 %v780_v50  ;;  %v788_v58 = vmul.f32 1.442695, %v767_v41  ;;  %v760_v59 = vpack.c.bf16 %v744_v37, %v744_v37 }
 0x207   : > { %v772_v60 = vunpack.c.l.bf16 %v756_v43  ;;  %2018 = vpow2.f32 %v782_v52  ;;  %v790_v61 = vmul.f32 1.442695, %v768_v45  ;;  %v761_v63 = vpack.c.bf16 %v745_v38, %v745_v38  ;;  %v2439_v41 = vpop.permute.xlu1 %922 }
 0x208   : > { %v773_v0 = vunpack.c.l.bf16 %v757_v44  ;;  %2020 = vpow2.f32 %v784_v54  ;;  %v792_v1 = vmul.f32 1.442695, %v769_v18  ;;  %v774_v2 = vunpack.c.l.bf16 %v758_v55 }
 0x209   : > { %2022 = vpow2.f32 %v786_v57  ;;  %v794_v5 = vmul.f32 1.442695, %v770_v56  ;;  %v775_v6 = vunpack.c.l.bf16 %v759_v51  ;;  %v796_v7 = vmul.f32 1.442695, %v771_v53 }
 0x20a   : > { %1466 = vrot.lane.b32.xlu1 %v1453_v19, %s2164_s20  ;;  %2024 = vpow2.f32 %v788_v58  ;;  %v2425_v8 = vmul.f32 %v2326_v40, %v2389_v47  ;;  %v776_v11 = vunpack.c.l.bf16 %v760_v59  ;;  %v798_v12 = vmul.f32 1.442695, %v772_v60  ;;  %v943_v53 = vpop.permute.xlu2 %942  ;;  %s1595_s20 = scalar_lea.hbm %s2608_s10, %s1774_s4  ;;  %s2096_s4 = scalar_lea.hbm %s2608_s10, 16 }
 0x20b   : > { %v2015_v10 = vpop.eup %2014  ;;  %2026 = vpow2.f32 %v790_v61  ;;  %v777_v14 = vunpack.c.l.bf16 %v761_v63  ;;  %v800_v15 = vmul.f32 1.442695, %v773_v0  ;;  %v802_v21 = vmul.f32 1.442695, %v774_v2  ;;  %s1599_s19 = sshll.u32 %s1595_s20, 4  ;;  %s1600_s19 = int_to_ptr.hbm [resolvable:$true] %s1599_s19 }
 0x20c   : > { %v2017_v13 = vpop.eup %2016  ;;  %2028 = vpow2.f32 %v792_v1  ;;  %v810_v16 = vpack.c.bf16 %v2015_v10, %v2015_v10  ;;  %v804_v47 = vmul.f32 1.442695, %v775_v6  ;;  %v853_v23 = vrot.slane %v2425_v8, 2  ;;  %s2090_s28 = sshra.s32 %s1600_s19, 4  ;;  %s2091_s28 = int_to_ptr.hbm [resolvable:$true] %s2090_s28 }
 0x20d   : > { %v2019_v20 = vpop.eup %2018  ;;  %2030 = vpow2.f32 %v794_v5  ;;  %v811_v22 = vpack.c.bf16 %v2017_v13, %v2017_v13  ;;  %v806_v25 = vmul.f32 1.442695, %v776_v11  ;;  %v808_v28 = vmul.f32 1.442695, %v777_v14  ;;  %v917_v5 = vpop.permute.xlu0 %916  ;;  %s2092_s0 = scalar_lea.hbm %s2091_s28, 8  ;;  %p2097_p5 = scmp.lt.s32.totalorder %s2091_s28, %s2608_s10 }
 0x20e   : > { %v2021_v40 = vpop.eup %2020  ;;  %2032 = vpow2.f32 %v796_v7  ;;  %v812_v19 = vpack.c.bf16 %v2019_v20, %v2019_v20  ;;  %827 = vst.msk [vmem:[#allocation4] sm:$0xf] %vm826_vm6, %v810_v16  ;;  %v856_v30 = vrot.slane %v2425_v8, 5  ;;  %v852_v36 = vrot.slane %v2425_v8, 1  ;;  %p2093_p1 = scmp.ne.s32.totalorder %s2091_s28, %s2092_s0  ;;  %p2098_p6 = scmp.lt.s32.totalorder %s2096_s4, %s2092_s0 }
 0x20f   : > { %v2023_v24 = vpop.eup %2022  ;;  %2034 = vpow2.f32 %v798_v12  ;;  %v813_v26 = vpack.c.bf16 %v2021_v40, %v2021_v40  ;;  %828 = vst.msk [vmem:[#allocation4 + $0x4] sm:$0xf] %vm826_vm6, %v811_v22  ;;  %v965_v39 = vperm.slane %v853_v23, 0  ;;  %v857_v55 = vrot.slane %v2425_v8, 6 }
 0x210   : > { %v2025_v27 = vpop.eup %2024  ;;  %2036 = vpow2.f32 %v800_v15  ;;  %v814_v29 = vpack.c.bf16 %v2023_v24, %v2023_v24  ;;  %829 = vst.msk [vmem:[#allocation4 + $0x8] sm:$0xf] %vm826_vm6, %v812_v19  ;;  %v2443_v18 = vperm.slane %v856_v30, 0  ;;  %v964_v54 = vperm.slane %v852_v36, 0  ;;  %p2094_p2 = pnand %p2093_p1, %p2260_p4  ;;  %p2099_p7 = por %p2098_p6, %p2097_p5 }
 0x211   : > { %v2027_v32 = vpop.eup %2026  ;;  %2038 = vpow2.f32 %v802_v21  ;;  %v815_v35 = vpack.c.bf16 %v2025_v27, %v2025_v27  ;;  %830 = vst.msk [vmem:[#allocation4 + $0xc] sm:$0xf] %vm826_vm6, %v813_v26  ;;  %v983_v51 = vmul.f32 %v965_v39, %v2387_v46  ;;  %v854_v58 = vrot.slane %v2425_v8, 3 }
 0x212   : > { %v2029_v37 = vpop.eup %2028  ;;  %2040 = vpow2.f32 %v804_v47  ;;  %v816_v38 = vpack.c.bf16 %v2027_v32, %v2027_v32  ;;  %831 = vst.msk [vmem:[#allocation4 + $0x10] sm:$0xf] %vm826_vm6, %v814_v29  ;;  %v984_v61 = vmul.f32 %v965_v39, %v2406_v3  ;;  %v963_v63 = vperm.slane %v2425_v8, 0  ;;  %p2095_p3 = pneg %p2094_p2 }
 0x213   : > { %v2031_v43 = vpop.eup %2030  ;;  %2042 = vpow2.f32 %v806_v25  ;;  %v817_v44 = vpack.c.bf16 %v2029_v37, %v2029_v37  ;;  %832 = vst.msk [vmem:[#allocation4 + $0x14] sm:$0xf] %vm826_vm6, %v815_v35  ;;  %v989_v2 = vmul.f32 %v2443_v18, %v2429_v17  ;;  %v855_v46 = vrot.slane %v2425_v8, 4  ;;  %v962_v25 = vpop.permute.xlu2 %961 }
 0x214   : > { %v2033_v45 = vpop.eup %2032  ;;  %2044 = vpow2.f32 %v808_v28  ;;  %v818_v48 = vpack.c.bf16 %v2031_v43, %v2031_v43  ;;  %833 = vst.msk [vmem:[#allocation4 + $0x18] sm:$0xf] %vm826_vm6, %v816_v38  ;;  %v981_v10 = vmul.f32 %v964_v54, %v2408_v4  ;;  %v969_v11 = vperm.slane %v857_v55, 0  ;;  %p2100_p9 = pnand %p2099_p7, %p2095_p3 }
 0x215   : > { %v2035_v50 = vpop.eup %2034  ;;  %v819_v52 = vpack.c.bf16 %v2033_v45, %v2033_v45  ;;  %834 = vst.msk [vmem:[#allocation4 + $0x1c] sm:$0xf] %vm826_vm6, %v817_v44  ;;  %v858_v3 = vrot.slane %v2425_v8, 7  ;;  %v999_v14 = vpack.c.bf16 %v983_v51, %v983_v51  ;;  %v982_v15 = vmul.f32 %v964_v54, %v2416_v42  ;;  %v936_v8 = vpop.permute.xlu1 %935 }
 0x216   : > { %v2037_v56 = vpop.eup %2036  ;;  %v820_v57 = vpack.c.bf16 %v2035_v50, %v2035_v50  ;;  %835 = vst.msk [vmem:[#allocation4 + $0x20] sm:$0xf] %vm826_vm6, %v818_v48  ;;  %v966_v16 = vperm.slane %v854_v58, 0  ;;  %v1000_v20 = vpack.c.bf16 %v984_v61, %v984_v61  ;;  %v979_v21 = vmul.f32 %v963_v63, %v2421_v62  ;;  %v949_v29 = vpop.permute.xlu0 %948  ;;  %v1796_v35 = vld [vmem:[#allocation4] sm:$0xff]   ;;  %v1027_v50 = vld [vmem:[#allocation2] sm:$0xff] }
 0x217   : > { %v2039_v59 = vpop.eup %2038  ;;  %v821_v60 = vpack.c.bf16 %v2037_v56, %v2037_v56  ;;  %836 = vst.msk [vmem:[#allocation4 + $0x24] sm:$0xf] %vm826_vm6, %v819_v52  ;;  %v1005_v4 = vpack.c.bf16 %v989_v2, %v989_v2  ;;  %v980_v22 = vmul.f32 %v963_v63, %v871_v31  ;;  %v967_v40 = vperm.slane %v855_v46, 0  ;;  %v1028_v52 = vld [vmem:[#allocation2 + $0x8] sm:$0xff] }
 0x218   : > { %v2041_v0 = vpop.eup %2040  ;;  %v822_v1 = vpack.c.bf16 %v2039_v59, %v2039_v59  ;;  %837 = vst.msk [vmem:[#allocation4 + $0x28] sm:$0xf] %vm826_vm6, %v820_v57  ;;  %v997_v47 = vpack.c.bf16 %v981_v10, %v981_v10  ;;  %v991_v19 = vmul.f32 %v969_v11, %v943_v53  ;;  %v970_v23 = vperm.slane %v858_v3, 0  ;;  %v1804_v58 = vld [vmem:[#allocation4 + $0x8] sm:$0xff]  }
 0x219   : > { %v2043_v6 = vpop.eup %2042  ;;  %v823_v7 = vpack.c.bf16 %v2041_v0, %v2041_v0  ;;  %838 = vst.msk [vmem:[#allocation4 + $0x2c] sm:$0xf] %vm826_vm6, %v821_v60  ;;  %v998_v42 = vpack.c.bf16 %v982_v15, %v982_v15  ;;  %v985_v24 = vmul.f32 %v966_v16, %v2427_v9  ;;  %v995_v62 = vpack.c.bf16 %v979_v21, %v979_v21 }
 0x21a   : > { %v2045_v12 = vpop.eup %2044  ;;  %v824_v13 = vpack.c.bf16 %v2043_v6, %v2043_v6  ;;  %839 = vst.msk [vmem:[#allocation4 + $0x30] sm:$0xf] %vm826_vm6, %v822_v1  ;;  %v986_v26 = vmul.f32 %v966_v16, %v2418_v49  ;;  %v996_v27 = vpack.c.bf16 %v980_v22, %v980_v22  ;;  %v987_v28 = vmul.f32 %v967_v40, %v917_v5  ;;  %v1812_v46 = vld [vmem:[#allocation4 + $0x10] sm:$0xff]  }
 0x21b   : > { %v825_v17 = vpack.c.bf16 %v2045_v12, %v2045_v12  ;;  %840 = vst.msk [vmem:[#allocation4 + $0x34] sm:$0xf] %vm826_vm6, %v823_v7  ;;  %v1007_v30 = vpack.c.bf16 %v991_v19, %v991_v19  ;;  %v994_v31 = vmul.f32 %v970_v23, %v962_v25  ;;  %v1001_v32 = vpack.c.bf16 %v985_v24, %v985_v24 }
 0x21c   : > { %841 = vst.msk [vmem:[#allocation4 + $0x38] sm:$0xf] %vm826_vm6, %v824_v13  ;;  %v988_v9 = vmul.f32 %v967_v40, %v2439_v41  ;;  %v1002_v36 = vpack.c.bf16 %v986_v26, %v986_v26  ;;  %v992_v37 = vmul.f32 %v969_v11, %v949_v29  ;;  %v1003_v49 = vpack.c.bf16 %v987_v28, %v987_v28  ;;  %v1820_v22 = vld [vmem:[#allocation4 + $0x18] sm:$0xff]  }
 0x21d   : > { %842 = vst.msk [vmem:[#allocation4 + $0x3c] sm:$0xf] %vm826_vm6, %v825_v17  ;;  %v990_v38 = vmul.f32 %v2443_v18, %v936_v8  ;;  %v956_v39 = vpop.permute.xlu1 %955  ;;  %v1010_v43 = vpack.c.bf16 %v994_v31, %v994_v31  ;;  %v1797_v45 = vunpack.c.l.bf16 %v1796_v35  ;;  %v1798_v48 = vunpack.c.h.bf16 %v1796_v35  ;;  %v2482_v18 = vpop.permute.xlu2 %1229 }
 0x21e   : > { %1015 = vst.msk [vmem:[#allocation5 + $0x10] sm:$0xf] %vm826_vm6, %v999_v14  ;;  %v993_v44 = vmul.f32 %v970_v23, %v956_v39  ;;  %v1004_v41 = vpack.c.bf16 %v988_v9, %v988_v9  ;;  %v1008_v54 = vpack.c.bf16 %v992_v37, %v992_v37  ;;  %v1805_v1 = vunpack.c.l.bf16 %v1804_v58  ;;  %v1828_v28 = vld [vmem:[#allocation4 + $0x20] sm:$0xff]  }
 0x21f   : > { %1016 = vst.msk [vmem:[#allocation5 + $0x14] sm:$0xf] %vm826_vm6, %v1000_v20  ;;  %v1006_v55 = vpack.c.bf16 %v990_v38, %v990_v38  ;;  %v1033_v57 = vmul.f32 %v1797_v45, %v1027_v50  ;;  %v1034_v51 = vmul.f32 %v1798_v48, %v1028_v52  ;;  %v1806_v2 = vunpack.c.h.bf16 %v1804_v58 }
 0x220   : > { %1021 = vst.msk [vmem:[#allocation5 + $0x28] sm:$0xf] %vm826_vm6, %v1005_v4  ;;  %v1009_v56 = vpack.c.bf16 %v993_v44, %v993_v44  ;;  %v1814_v16 = vunpack.c.h.bf16 %v1812_v46  ;;  %v1813_v20 = vunpack.c.l.bf16 %v1812_v46  ;;  %v1821_v25 = vunpack.c.l.bf16 %v1820_v22  ;;  %v1836_v44 = vld [vmem:[#allocation4 + $0x28] sm:$0xff]  }
 0x221   : > { %1013 = vst.msk [vmem:[#allocation5 + $0x8] sm:$0xf] %vm826_vm6, %v997_v47  ;;  %v1830_v38 = vunpack.c.h.bf16 %v1828_v28 }
 0x222   : > { %1014 = vst.msk [vmem:[#allocation5 + $0xc] sm:$0xf] %vm826_vm6, %v998_v42  ;;  %v1844_v58 = vld [vmem:[#allocation4 + $0x30] sm:$0xff]  }
 0x223   : > { %1011 = vst.msk [vmem:[#allocation5] sm:$0xf] %vm826_vm6, %v995_v62  ;;  %v1822_v62 = vunpack.c.h.bf16 %v1820_v22 }
 0x224   : > { %1012 = vst.msk [vmem:[#allocation5 + $0x4] sm:$0xf] %vm826_vm6, %v996_v27 }
 0x225   : > { %1023 = vst.msk [vmem:[#allocation5 + $0x30] sm:$0xf] %vm826_vm6, %v1007_v30  ;;  %v2488_v7 = vpop.permute.xlu1 %1223  ;;  %v2490_v14 = vpop.permute.xlu2 %1210 }
 0x226   : > { %1017 = vst.msk [vmem:[#allocation5 + $0x18] sm:$0xf] %vm826_vm6, %v1001_v32  ;;  %v1816_v13 = vld [vmem:[#allocation5 + $0x10] sm:$0xff]  }
 0x227   : > { %1018 = vst.msk [vmem:[#allocation5 + $0x1c] sm:$0xf] %vm826_vm6, %v1002_v36  ;;  %v1817_v21 = vunpack.c.l.bf16 %v1816_v13  ;;  %v1818_v4 = vunpack.c.h.bf16 %v1816_v13 }
 0x228   : > { %1019 = vst.msk [vmem:[#allocation5 + $0x20] sm:$0xf] %vm826_vm6, %v1003_v49  ;;  %v1829_v49 = vunpack.c.l.bf16 %v1828_v28 }
 0x229   : > { %1026 = vst.msk [vmem:[#allocation5 + $0x3c] sm:$0xf] %vm826_vm6, %v1010_v43  ;;  %v1808_v61 = vld [vmem:[#allocation5 + $0x8] sm:$0xff]  }
 0x22a   : > { %1020 = vst.msk [vmem:[#allocation5 + $0x24] sm:$0xf] %vm826_vm6, %v1004_v41  ;;  %v1810_v5 = vunpack.c.h.bf16 %v1808_v61  ;;  %v1809_v6 = vunpack.c.l.bf16 %v1808_v61 }
 0x22b   : > { %v1800_v53 = vld [vmem:[#allocation5] sm:$0xff]   ;;  %1024 = vst.msk [vmem:[#allocation5 + $0x34] sm:$0xf] %vm826_vm6, %v1008_v54 }
 0x22c   : > { %v1801_v59 = vunpack.c.l.bf16 %v1800_v53  ;;  %v1802_v60 = vunpack.c.h.bf16 %v1800_v53  ;;  %1022 = vst.msk [vmem:[#allocation5 + $0x2c] sm:$0xf] %vm826_vm6, %v1006_v55  ;;  %v1838_v53 = vunpack.c.h.bf16 %v1836_v44 }
 0x22d   : > { %1025 = vst.msk [vmem:[#allocation5 + $0x38] sm:$0xf] %vm826_vm6, %v1009_v56  ;;  %v2500_v45 = vpop.permute.xlu2 %1249 }
 0x22e   : > { %v1039_v63 = vadd.f32 %v1801_v59, %v1033_v57  ;;  %v1040_v0 = vadd.f32 %v1802_v60, %v1034_v51  ;;  %v1824_v23 = vld [vmem:[#allocation5 + $0x18] sm:$0xff]   ;;  %v1837_v51 = vunpack.c.l.bf16 %v1836_v44 }
 0x22f   : > { %v1825_v26 = vunpack.c.l.bf16 %v1824_v23  ;;  %v1826_v27 = vunpack.c.h.bf16 %v1824_v23 }
 0x230   : > { %v1041_v10 = vpack.c.bf16 %v1039_v63, %v1039_v63  ;;  %v1042_v11 = vpack.c.bf16 %v1040_v0, %v1040_v0  ;;  %v1050_v3 = vmul.f32 %v1805_v1, %v1039_v63  ;;  %v1051_v12 = vmul.f32 %v1806_v2, %v1040_v0  ;;  %v1852_v0 = vld [vmem:[#allocation4 + $0x38] sm:$0xff]  }
 0x231   : > { %v1832_v35 = vld [vmem:[#allocation5 + $0x20] sm:$0xff]  }
 0x232   : > { %1043 = vst.msk [vmem:[#allocation5] sm:$0xf] %vm826_vm6, %v1041_v10  ;;  %v1058_v15 = vadd.f32 %v1810_v5, %v1051_v12  ;;  %v1057_v17 = vadd.f32 %v1809_v6, %v1050_v3  ;;  %v1833_v39 = vunpack.c.l.bf16 %v1832_v35  ;;  %v1834_v43 = vunpack.c.h.bf16 %v1832_v35  ;;  %v1848_v63 = vld [vmem:[#allocation5 + $0x30] sm:$0xff]   ;;  %v1237_v6 = vpop.permute.xlu0 %1236 }
 0x233   : > { %1044 = vst.msk [vmem:[#allocation5 + $0x4] sm:$0xf] %vm826_vm6, %v1042_v11  ;;  %v1840_v54 = vld [vmem:[#allocation5 + $0x28] sm:$0xff]   ;;  %v1845_v10 = vunpack.c.l.bf16 %v1844_v58  ;;  %v1846_v11 = vunpack.c.h.bf16 %v1844_v58 }
 0x234   : > { %v1060_v40 = vpack.c.bf16 %v1058_v15, %v1058_v15  ;;  %v1069_v8 = vmul.f32 %v1814_v16, %v1058_v15  ;;  %v1059_v47 = vpack.c.bf16 %v1057_v17, %v1057_v17  ;;  %v1068_v19 = vmul.f32 %v1813_v20, %v1057_v17  ;;  %v2496_v29 = vpop.permute.xlu1 %1242 }
 0x235   : > { %v1841_v60 = vunpack.c.l.bf16 %v1840_v54  ;;  %v1842_v61 = vunpack.c.h.bf16 %v1840_v54  ;;  %v1849_v17 = vunpack.c.l.bf16 %v1848_v63  ;;  %v1853_v20 = vunpack.c.l.bf16 %v1852_v0 }
 0x236   : > { %1062 = vst.msk [vmem:[#allocation5 + $0xc] sm:$0xf] %vm826_vm6, %v1060_v40  ;;  %v1075_v42 = vadd.f32 %v1817_v21, %v1068_v19  ;;  %v1076_v24 = vadd.f32 %v1818_v4, %v1069_v8  ;;  %v1856_v21 = vld [vmem:[#allocation5 + $0x38] sm:$0xff]   ;;  %v1850_v40 = vunpack.c.h.bf16 %v1848_v63  ;;  %v1269_v8 = vpop.permute.xlu2 %1268 }
 0x237   : > { %1061 = vst.msk [vmem:[#allocation5 + $0x8] sm:$0xf] %vm826_vm6, %v1059_v47 }
 0x238   : > { %v1077_v30 = vpack.c.bf16 %v1075_v42, %v1075_v42  ;;  %v1078_v31 = vpack.c.bf16 %v1076_v24, %v1076_v24  ;;  %v1086_v32 = vmul.f32 %v1821_v25, %v1075_v42  ;;  %v1087_v9 = vmul.f32 %v1822_v62, %v1076_v24 }
 0x239   : > { %v1854_v62 = vunpack.c.h.bf16 %v1852_v0 }
 0x23a   : > { %v1093_v36 = vadd.f32 %v1825_v26, %v1086_v32  ;;  %v1094_v37 = vadd.f32 %v1826_v27, %v1087_v9  ;;  %1079 = vst.msk [vmem:[#allocation5 + $0x10] sm:$0xf] %vm826_vm6, %v1077_v30  ;;  %v1860_v25 = vld [vmem:[#allocation5] sm:$0xff]   ;;  %v1857_v26 = vunpack.c.l.bf16 %v1856_v21  ;;  %v1858_v9 = vunpack.c.h.bf16 %v1856_v21  ;;  %v1256_v44 = vpop.permute.xlu0 %1255 }
 0x23b   : > { %1080 = vst.msk [vmem:[#allocation5 + $0x14] sm:$0xf] %vm826_vm6, %v1078_v31 }
 0x23c   : > { %v1095_v48 = vpack.c.bf16 %v1093_v36, %v1093_v36  ;;  %v1096_v41 = vpack.c.bf16 %v1094_v37, %v1094_v37  ;;  %v1104_v50 = vmul.f32 %v1829_v49, %v1093_v36  ;;  %v1105_v52 = vmul.f32 %v1830_v38, %v1094_v37  ;;  %v1217_v12 = vpop.permute.xlu1 %1216 }
 0x23d   : > { %v1861_v36 = vunpack.c.l.bf16 %v1860_v25 }
 0x23e   : > { %1097 = vst.msk [vmem:[#allocation5 + $0x18] sm:$0xf] %vm826_vm6, %v1095_v48  ;;  %v1891_v55 = vld [vmem:[#allocation5 + $0x8] sm:$0xff]   ;;  %v1111_v56 = vadd.f32 %v1833_v39, %v1104_v50  ;;  %v1112_v57 = vadd.f32 %v1834_v43, %v1105_v52 }
 0x23f   : > { %1098 = vst.msk [vmem:[#allocation5 + $0x1c] sm:$0xf] %vm826_vm6, %v1096_v41  ;;  %v1866_v59 = vunpack.c.h.bf16 %v1891_v55  ;;  %v1865_v3 = vunpack.c.l.bf16 %v1891_v55 }
 0x240   : > { %v1113_v1 = vpack.c.bf16 %v1111_v56, %v1111_v56  ;;  %v1114_v2 = vpack.c.bf16 %v1112_v57, %v1112_v57  ;;  %v1122_v5 = vmul.f32 %v1837_v51, %v1111_v56  ;;  %v1123_v46 = vmul.f32 %v1838_v53, %v1112_v57 }
 0x241   : > { %v1312_v4 = vmul.f32 %v1866_v59, %v2482_v18  ;;  %v1311_v27 = vmul.f32 %v1865_v3, %v2488_v7  ;;  %v1862_v51 = vunpack.c.h.bf16 %v1860_v25 }
 0x242   : > { %1115 = vst.msk [vmem:[#allocation5 + $0x20] sm:$0xf] %vm826_vm6, %v1113_v1  ;;  %v1129_v13 = vadd.f32 %v1841_v60, %v1122_v5  ;;  %v1130_v15 = vadd.f32 %v1842_v61, %v1123_v46  ;;  %v1892_v16 = vld [vmem:[#allocation5 + $0x10] sm:$0xff]   ;;  %v1309_v46 = vmul.f32 %v1861_v36, %v2490_v14 }
 0x243   : > { %1116 = vst.msk [vmem:[#allocation5 + $0x24] sm:$0xf] %vm826_vm6, %v1114_v2  ;;  %v1869_v22 = vunpack.c.l.bf16 %v1892_v16  ;;  %v1870_v47 = vunpack.c.h.bf16 %v1892_v16  ;;  %v1335_v35 = vsel %vm402_vm0, %v1312_v4, 0.0  ;;  %v1334_v48 = vsel %vm402_vm0, %v1311_v27, 0.0  ;;  %v1282_v2 = vpop.permute.xlu2 %1281 }
 0x244   : > { %v1131_v19 = vpack.c.bf16 %v1129_v13, %v1129_v13  ;;  %v1132_v23 = vpack.c.bf16 %v1130_v15, %v1130_v15  ;;  %v1140_v42 = vmul.f32 %v1845_v10, %v1129_v13  ;;  %v1141_v24 = vmul.f32 %v1846_v11, %v1130_v15 }
 0x245   : > { %v1314_v28 = vmul.f32 %v1870_v47, %v2496_v29  ;;  %v1313_v18 = vmul.f32 %v1869_v22, %v1237_v6  ;;  %v1336_v63 = vadd.f32 %v1335_v35, %v1334_v48  ;;  %v1310_v0 = vmul.f32 %v1862_v51, %v1217_v12 }
 0x246   : > { %1133 = vst.msk [vmem:[#allocation5 + $0x28] sm:$0xf] %vm826_vm6, %v1131_v19  ;;  %v1893_v30 = vld [vmem:[#allocation5 + $0x18] sm:$0xff]   ;;  %v1147_v31 = vadd.f32 %v1849_v17, %v1140_v42  ;;  %v1148_v32 = vadd.f32 %v1850_v40, %v1141_v24  ;;  %v1325_v17 = vsel %vm402_vm0, %v1309_v46, 0.0 }
 0x247   : > { %1134 = vst.msk [vmem:[#allocation5 + $0x2c] sm:$0xf] %vm826_vm6, %v1132_v23  ;;  %v1873_v37 = vunpack.c.l.bf16 %v1893_v30  ;;  %v1874_v49 = vunpack.c.h.bf16 %v1893_v30  ;;  %v1344_v50 = vsel %vm402_vm0, %v1314_v28, 0.0  ;;  %v1343_v54 = vsel %vm402_vm0, %v1313_v18, 0.0  ;;  %v1289_v18 = vpop.permute.xlu0 %1288 }
 0x248   : > { %v1149_v38 = vpack.c.bf16 %v1147_v31, %v1147_v31  ;;  %v1150_v39 = vpack.c.bf16 %v1148_v32, %v1148_v32  ;;  %v1158_v43 = vmul.f32 %v1853_v20, %v1147_v31  ;;  %v1159_v7 = vmul.f32 %v1854_v62, %v1148_v32 }
 0x249   : > { %v1315_v29 = vmul.f32 %v1873_v37, %v2500_v45  ;;  %v1316_v41 = vmul.f32 %v1874_v49, %v1256_v44  ;;  %v1345_v59 = vadd.f32 %v1344_v50, %v1343_v54  ;;  %v1337_v3 = vrot.slane %v1336_v63, 4  ;;  %v1794_v44 = vld [vmem:[%s2607_s9 + $0x18] sm:$0xff] }
 0x24a   : > { %v1165_v55 = vadd.f32 %v1857_v26, %v1158_v43  ;;  %v1166_v56 = vadd.f32 %v1858_v9, %v1159_v7  ;;  %1151 = vst.msk [vmem:[#allocation5 + $0x30] sm:$0xf] %vm826_vm6, %v1149_v38  ;;  %v1894_v57 = vld [vmem:[#allocation5 + $0x20] sm:$0xff]   ;;  %v1326_v15 = vsel %vm402_vm0, %v1310_v0, 0.0  ;;  %v1997_v43 = vld [vmem:[%s2606_s8] ss:$0 sm:$0xff]  ;;  %1573 = vmatpush.bf16.msrb.mxu1 %v1794_v44 }
 0x24b   : > { %v1352_v53 = vsel %vm402_vm0, %v1315_v29, 0.0  ;;  %1152 = vst.msk [vmem:[#allocation5 + $0x34] sm:$0xf] %vm826_vm6, %v1150_v39  ;;  %v1353_v45 = vsel %vm402_vm0, %v1316_v41, 0.0  ;;  %v1878_v58 = vunpack.c.h.bf16 %v1894_v57  ;;  %v1877_v5 = vunpack.c.l.bf16 %v1894_v57  ;;  %v1302_v23 = vpop.permute.xlu2 %1301 }
 0x24c   : > { %v1263_v52 = vpop.permute.xlu1 %1262  ;;  %v1167_v60 = vpack.c.bf16 %v1165_v55, %v1165_v55  ;;  %v1168_v61 = vpack.c.bf16 %v1166_v56, %v1166_v56  ;;  %1171 = vst.msk [vmem:[#allocation2] sm:$0xff] %vm402_vm0, %v1165_v55  ;;  %v1354_v6 = vadd.f32 %v1353_v45, %v1352_v53  ;;  %v1346_v10 = vrot.slane %v1345_v59, 4 }
 0x24d   : > { %1172 = vst.msk [vmem:[#allocation2 + $0x8] sm:$0xff] %vm402_vm0, %v1166_v56  ;;  %v1318_v1 = vmul.f32 %v1878_v58, %v1269_v8  ;;  %v1317_v11 = vmul.f32 %v1877_v5, %v1263_v52  ;;  %v1327_v40 = vadd.f32 %v1326_v15, %v1325_v17  ;;  %v1338_v47 = vadd.f32 %v1337_v3, %v1336_v63 }
 0x24e   : > { %1169 = vst.msk [vmem:[#allocation5 + $0x38] sm:$0xf] %vm826_vm6, %v1167_v60  ;;  %v1895_v13 = vld [vmem:[#allocation5 + $0x28] sm:$0xff]   ;;  %v1355_v20 = vrot.slane %v1354_v6, 4  ;;  %v1347_v22 = vadd.f32 %v1346_v10, %v1345_v59  ;;  %v1401_v57 = vmul.f32 %v1997_v43, %v2318_v33  ;;  %v2539_v60 = vmul.f32 %v1997_v43, %v2320_v34  ;;  %v1792_v34 = vld [vmem:[%s2607_s9 + $0x8] sm:$0xff] }
 0x24f   : > { %1170 = vst.msk [vmem:[#allocation5 + $0x3c] sm:$0xf] %vm826_vm6, %v1168_v61  ;;  %v1362_v12 = vsel %vm402_vm0, %v1318_v1, 0.0  ;;  %v1361_v16 = vsel %vm402_vm0, %v1317_v11, 0.0  ;;  %v1882_v4 = vunpack.c.h.bf16 %v1895_v13  ;;  %v1881_v8 = vunpack.c.l.bf16 %v1895_v13  ;;  %v1461_v45 = vpop.permute.xlu0 %1460  ;;  %v1793_v1 = vld [vmem:[%s2607_s9 + $0x10] sm:$0xff] }
 0x250   : > { %v1363_v21 = vadd.f32 %v1362_v12, %v1361_v16  ;;  %v1356_v24 = vadd.f32 %v1355_v20, %v1354_v6  ;;  %v1348_v26 = vrot.slane %v1347_v22, 2  ;;  %v1328_v27 = vrot.slane %v1327_v40, 4  ;;  %1574 = vmatpush.bf16.msrb.mxu1 %v1793_v1 }
 0x251   : > { %v1320_v62 = vmul.f32 %v1882_v4, %v1282_v2  ;;  %v1339_v28 = vrot.slane %v1338_v47, 2  ;;  %v1407_v6 = vrot.slane %v1401_v57, 7  ;;  %v1406_v13 = vrot.slane %v1401_v57, 6 }
 0x252   : > { %v1364_v19 = vrot.slane %v1363_v21, 4  ;;  %v1896_v30 = vld [vmem:[#allocation5 + $0x30] sm:$0xff]   ;;  %v1357_v9 = vrot.slane %v1356_v24, 2  ;;  %v1329_v36 = vadd.f32 %v1328_v27, %v1327_v40  ;;  %v1349_v37 = vadd.f32 %v1348_v26, %v1347_v22 }
 0x253   : > { %v1371_v35 = vsel %vm402_vm0, %v1320_v62, 0.0  ;;  %v1885_v49 = vunpack.c.l.bf16 %v1896_v30  ;;  %v1340_v38 = vadd.f32 %v1339_v28, %v1338_v47  ;;  %v1459_v50 = vpop.permute.xlu2 %1458  ;;  %v1886_v56 = vunpack.c.h.bf16 %v1896_v30 }
 0x254   : > { %v1276_v14 = vpop.permute.xlu1 %1275  ;;  %v1365_v25 = vadd.f32 %v1364_v19, %v1363_v21  ;;  %v1358_v29 = vadd.f32 %v1357_v9, %v1356_v24  ;;  %v1330_v48 = vrot.slane %v1329_v36, 2  ;;  %v1350_v41 = vrot.slane %v1349_v37, 1  ;;  %1575 = vmatpush.bf16.msrb.mxu1 %v1792_v34 }
 0x255   : > { %v1319_v42 = vmul.f32 %v1881_v8, %v1276_v14  ;;  %v1321_v52 = vmul.f32 %v1885_v49, %v1289_v18  ;;  %v1341_v54 = vrot.slane %v1340_v38, 1  ;;  %v1408_v16 = vrot.slane %v2539_v60, 1 }
 0x256   : > { %v1366_v31 = vrot.slane %v1365_v25, 2  ;;  %v1359_v58 = vrot.slane %v1358_v29, 1  ;;  %v1351_v61 = vadd.f32 %v1350_v41, %v1349_v37  ;;  %v1897_v63 = vld [vmem:[#allocation5 + $0x38] sm:$0xff]   ;;  %v1331_v0 = vadd.f32 %v1330_v48, %v1329_v36 }
 0x257   : > { %v1370_v32 = vsel %vm402_vm0, %v1319_v42, 0.0  ;;  %v1379_v2 = vsel %vm402_vm0, %v1321_v52, 0.0  ;;  %v1342_v5 = vadd.f32 %v1341_v54, %v1340_v38  ;;  %v1889_v3 = vunpack.c.l.bf16 %v1897_v63  ;;  %v1791_v42 = vld [vmem:[%s2607_s9] sm:$0xff]  ;;  %v1465_v18 = vpop.permute.xlu0 %1464 }
 0x258   : > { %v1372_v39 = vadd.f32 %v1371_v35, %v1370_v32  ;;  %v1367_v7 = vadd.f32 %v1366_v31, %v1365_v25  ;;  %v1360_v15 = vadd.f32 %v1359_v58, %v1358_v29  ;;  %v1422_v12 = vadd.f32 %v1407_v6, %v1351_v61  ;;  %1576 = vmatpush.bf16.msrb.mxu1 %v1791_v42 }
 0x259   : > { %v1332_v20 = vrot.slane %v1331_v0, 1  ;;  %v1323_v21 = vmul.f32 %v1889_v3, %v1302_v23  ;;  %v1421_v14 = vadd.f32 %v1406_v13, %v1342_v5  ;;  %v1890_v22 = vunpack.c.h.bf16 %v1897_v63 }
 0x25a   : > { %v1373_v55 = vrot.slane %v1372_v39, 4  ;;  %v1368_v51 = vrot.slane %v1367_v7, 1  ;;  %v1423_v25 = vadd.f32 %v2539_v60, %v1360_v15  ;;  %v1482_v26 = vmul.f32 %v1461_v45, %v1422_v12 }
 0x25b   : > { %v1463_v8 = vpop.permute.xlu2 %1462  ;;  %v1481_v24 = vmul.f32 %v1459_v50, %v1421_v14  ;;  %v1333_v28 = vadd.f32 %v1332_v20, %v1331_v0  ;;  %v1388_v23 = vsel %vm402_vm0, %v1323_v21, 0.0  ;;  %v1405_v49 = vrot.slane %v1401_v57, 5 }
 0x25c   : > { %v1374_v46 = vadd.f32 %v1373_v55, %v1372_v39  ;;  %v1369_v10 = vadd.f32 %v1368_v51, %v1367_v7  ;;  %v1483_v30 = vmul.f32 %v1463_v8, %v1423_v25  ;;  %v1490_v38 = vpack.c.bf16 %v1482_v26, %v1482_v26 }
 0x25d   : > { %v1489_v37 = vpack.c.bf16 %v1481_v24, %v1481_v24  ;;  %v1420_v44 = vadd.f32 %v1405_v49, %v1333_v28  ;;  %v1410_v41 = vrot.slane %v2539_v60, 3  ;;  %v1411_v6 = vrot.slane %v2539_v60, 4 }
 0x25e   : > { %v1375_v4 = vrot.slane %v1374_v46, 2  ;;  %v1424_v40 = vadd.f32 %v1408_v16, %v1369_v10  ;;  %v1491_v7 = vpack.c.bf16 %v1483_v30, %v1483_v30  ;;  %v1514_v51 = vunpack.c.l.b16 %v1490_v38 }
 0x25f   : > { %v1513_v55 = vunpack.c.l.b16 %v1489_v37 }
 0x260   : > { %v1376_v32 = vadd.f32 %v1375_v4, %v1374_v46  ;;  %v1484_v9 = vmul.f32 %v1465_v18, %v1424_v40  ;;  %v1515_v58 = vunpack.c.l.b16 %v1491_v7  ;;  %v1409_v46 = vrot.slane %v2539_v60, 2 }
 0x262   : > { %v1377_v29 = vrot.slane %v1376_v32, 1  ;;  %v1492_v48 = vpack.c.bf16 %v1484_v9, %v1484_v9 }
 0x264   : > { %v1295_v53 = vpop.permute.xlu1 %1294  ;;  %v1378_v61 = vadd.f32 %v1377_v29, %v1376_v32  ;;  %v1516_v1 = vunpack.c.l.b16 %v1492_v48 }
 0x265   : > { %v1322_v59 = vmul.f32 %v1886_v56, %v1295_v53 }
 0x266   : > { %v1425_v3 = vadd.f32 %v1409_v46, %v1378_v61 }
 0x267   : > { %v1380_v33 = vsel %vm402_vm0, %v1322_v59, 0.0  ;;  %v1469_v59 = vpop.permute.xlu2 %1468 }
 0x268   : > { %v1381_v11 = vadd.f32 %v1380_v33, %v1379_v2  ;;  %v1520_v2 = vrot.slane %v1513_v55, 7  ;;  %v1523_v33 = vrot.slane %v1514_v51, 6 }
 0x26a   : > { %v1382_v17 = vrot.slane %v1381_v11, 4 }
 0x26c   : > { %v1383_v47 = vadd.f32 %v1382_v17, %v1381_v11  ;;  %v1308_v19 = vpop.permute.xlu1 %1307  ;;  %v1526_v11 = vrot.slane %v1515_v58, 5  ;;  %v1529_v17 = vrot.slane %v1516_v1, 4 }
 0x26d   : > { %v1324_v62 = vmul.f32 %v1890_v22, %v1308_v19  ;;  %v1471_v22 = vpop.permute.xlu0 %1470 }
 0x26e   : > { %v1384_v27 = vrot.slane %v1383_v47, 2 }
 0x26f   : > { %v1389_v31 = vsel %vm402_vm0, %v1324_v62, 0.0 }
 0x270   : > { %v1385_v35 = vadd.f32 %v1384_v27, %v1383_v47  ;;  %v1390_v36 = vadd.f32 %v1389_v31, %v1388_v23 }
 0x272   : > { %v1386_v39 = vrot.slane %v1385_v35, 1  ;;  %v1391_v43 = vrot.slane %v1390_v36, 4 }
 0x274   : > { %v1387_v50 = vadd.f32 %v1386_v39, %v1385_v35  ;;  %v1392_v52 = vadd.f32 %v1391_v43, %v1390_v36  ;;  %v1457_v54 = vpop.permute.xlu1 %1456 }
 0x275   : > { %v1480_v56 = vmul.f32 %v1457_v54, %v1420_v44 }
 0x276   : > { %v1426_v53 = vadd.f32 %v1410_v41, %v1387_v50  ;;  %v1393_v45 = vrot.slane %v1392_v52, 2 }
 0x277   : > { %v1488_v57 = vpack.c.bf16 %v1480_v56, %v1480_v56 }
 0x278   : > { %v1486_v63 = vmul.f32 %v1469_v59, %v1426_v53  ;;  %v1394_v0 = vadd.f32 %v1393_v45, %v1392_v52 }
 0x279   : > { %v1512_v5 = vunpack.c.l.b16 %v1488_v57 }
 0x27a   : > { %v1395_v10 = vrot.slane %v1394_v0, 1  ;;  %v1494_v13 = vpack.c.bf16 %v1486_v63, %v1486_v63 }
 0x27b   : > { %v1522_v34 = vsel %vm1521_vm7, %v1520_v2, %v1512_v5 }
 0x27c   : > { %v1396_v15 = vadd.f32 %v1395_v10, %v1394_v0  ;;  %v1525_v12 = vsel %vm1524_vm8, %v1523_v33, %v1522_v34  ;;  %v1467_v16 = vpop.permute.xlu1 %1466  ;;  %v1518_v60 = vunpack.c.l.b16 %v1494_v13 }
 0x27d   : > { %v1528_v20 = vsel %vm1527_vm9, %v1526_v11, %v1525_v12  ;;  %v1485_v21 = vmul.f32 %v1467_v16, %v1425_v3 }
 0x27e   : > { %v1427_v14 = vadd.f32 %v1411_v6, %v1396_v15  ;;  %v1531_v4 = vsel %vm1530_vm10, %v1529_v17, %v1528_v20  ;;  %v1535_v24 = vrot.slane %v1518_v60, 2 }
 0x27f   : > { %v1493_v40 = vpack.c.bf16 %v1485_v21, %v1485_v21 }
 0x280   : > { %v1487_v8 = vmul.f32 %v1471_v22, %v1427_v14 }
 0x281   : > { %v1517_v47 = vunpack.c.l.b16 %v1493_v40 }
 0x282   : > { %v1495_v19 = vpack.c.bf16 %v1487_v8, %v1487_v8 }
 0x283   : > { %v1532_v42 = vrot.slane %v1517_v47, 3 }
 0x284   : > { %v1519_v25 = vunpack.c.l.b16 %v1495_v19 }
 0x285   : > { %v1534_v62 = vsel %vm1533_vm11, %v1532_v42, %v1531_v4 }
 0x286   : > { %v1537_v26 = vsel %vm1536_vm12, %v1535_v24, %v1534_v62  ;;  %v1538_v27 = vrot.slane %v1519_v25, 1 }
 0x288   : > { %v1540_v28 = vsel %vm1539_vm13, %v1538_v27, %v1537_v26 }
 0x289   : > { %v1541_v23 = vpack.c.b16 %v1540_v28, %v1540_v28 }
 0x28b   : > { %1772 = vmatmul.msk.bf16.vlgmr.msrb.gmra.mxu1 %vm402_vm0, %v1541_v23 }
 0x308   : > { %v1578_v18 = vpop.f32.mrf.mxu1 }
 0x309   : > { %1582 = vst.msk [vmem:[%s389_s22] sm:$0xff] %vm423_vm1, %v1578_v18 }
 0x30a   : > { %2103 = shalt.err (!%p2100_p9)
}
 0x30b   : > { %1902 = dma.vmem_to_hbm [thread:$0]  (%p2260_p4), %s1598_s24, 128, %s1600_s19, %s1584_s27  }
 0x310   : > { %v1580_v30 = vpop.f32.mrf.mxu1 }
 0x311 PF: > { %p1914_p10 = scmp.ge.s32.totalorder %s2158_s18, 2  ;;  %s1611_s29 = sand.u32 1, %s2138_s13  }
 0x312   : > { %s1612_s1 = scalar_lea.sflag [#allocation8], %s1611_s29 }
 0x313   : > { %p1909_p11 = pnand %p1914_p10, %p2267_p8 }
 0x315   : > { %p1910_p12 = pneg %p1909_p11 }
 0x317   : > { %2133 = dma.done.wait (%p1910_p12), %s1612_s1, 128  }
 0x318   : > { %2135 = vsyncadd (%p1910_p12), %s1612_s1, 4294967168  ;;  %s24_s18 = sadd.s32 1, %s2158_s18   ;;  %s2617_s13 = smov %s2142_s14 }
 0x319   : > { %p21_p13 = scmp.ge.s32.totalorder %s24_s18, 4   ;;  %s2618_s14 = smov %s2146_s15 }
 0x31a   : > { %s2619_s15 = smov %s2273_s26  ;;  %s2620_s16 = smov %s2154_s17 }
 0x31b   : > { %s2621_s17 = smov %s2623_s21  ;;  %23 = sbr.rel (!%p21_p13) target bundleno = 9 (0x9), region = 118 }
 0x320   :  { %1618 = vsyncpa [#allocation7], 1 }
 0x321   :  { %1620 = vsyncpa [#allocation7 + $0x1], 1 }
 0x322   :  { %1621 = vsyncpa [#allocation8], 1 }
 0x323   :  { %1623 = vsyncpa [#allocation8 + $0x1], 1 }

</bundles_post_ra>
